<compile_context>
chip_gen: v7x
topology: tpu7x:2x2x1
jax: 0.10.0
libtpu: 0.0.40
codegen_flags: <defaults>
</compile_context>

<pallas_src>
import functools

import jax
import jax.numpy as jnp
from jax.experimental import pallas as pl
from jax.experimental.pallas import tpu as pltpu


VMEM_LIMIT_BYTES = 32 * 1024 * 1024   # fits v5e / v6e / v7x scoped VMEM


def _pick_tile(dim, target):
    """Tile = whole dim if small / non-divisible, else the (8,128)-aligned target."""
    if dim <= target or dim % target != 0:
        return dim
    return target


# ----------------------------------------------------------------------------
# Tiled linear kernel: y = x @ w + b (+ GELU) (+ residual), f32 accumulation.
# ----------------------------------------------------------------------------
def _linear_kernel(*refs, act, has_residual):
    if has_residual:
        x_ref, w_ref, b_ref, r_ref, o_ref, acc_ref = refs
    else:
        x_ref, w_ref, b_ref, o_ref, acc_ref = refs
        r_ref = None

    @pl.when(pl.program_id(2) == 0)
    def _():
        acc_ref[...] = jnp.zeros_like(acc_ref)

    # Feed the MXU in the native input dtype; accumulate in f32.
    acc_ref[...] += jnp.dot(x_ref[...], w_ref[...],
                            preferred_element_type=jnp.float32)

    @pl.when(pl.program_id(2) == pl.num_programs(2) - 1)
    def _():
        y = acc_ref[...] + b_ref[...].astype(jnp.float32)
        if act == "gelu":
            # TODO(synk): HF Bert uses exact (erf) GELU; tanh approximation used here.
            y = jax.nn.gelu(y, approximate=True)
        if has_residual:
            y = y + r_ref[...].astype(jnp.float32)
        o_ref[...] = y.astype(o_ref.dtype)


def linear(x, w, b, *, act=None, residual=None, tm=256, tn=256, tk=256):
    """y = x @ w + b (+ act)(+ residual), x:[M,K] w:[K,N] b:[N] -> [M,N]."""
    M, K = x.shape
    N = w.shape[1]
    tm = _pick_tile(M, tm)
    tn = _pick_tile(N, tn)
    tk = _pick_tile(K, tk)
    grid = (M // tm, N // tn, K // tk)

    in_specs = [
        pl.BlockSpec((tm, tk), lambda i, j, k: (i, k)),
        pl.BlockSpec((tk, tn), lambda i, j, k: (k, j)),
        pl.BlockSpec((1, tn), lambda i, j, k: (0, j)),
    ]
    args = [x, w, b.reshape(1, N)]
    if residual is not None:
        in_specs.append(pl.BlockSpec((tm, tn), lambda i, j, k: (i, j)))
        args.append(residual)

    return pl.pallas_call(
        functools.partial(_linear_kernel, act=act,
                          has_residual=residual is not None),
        grid=grid,
        out_shape=jax.ShapeDtypeStruct((M, N), x.dtype),
        in_specs=in_specs,
        out_specs=pl.BlockSpec((tm, tn), lambda i, j, k: (i, j)),
        scratch_shapes=[pltpu.VMEM((tm, tn), jnp.float32)],
        compiler_params=pltpu.CompilerParams(
            dimension_semantics=("parallel", "parallel", "arbitrary"),
            vmem_limit_bytes=VMEM_LIMIT_BYTES),
    )(*args)


# ----------------------------------------------------------------------------
# Fused BERT-encoder layer kernel (QKV + attention + O-proj + LN1 + FFN + LN2)
# ----------------------------------------------------------------------------
def _layer_norm_f32(x, g, b, eps):
    mu = jnp.mean(x, axis=-1, keepdims=True)
    xc = x - mu
    var = jnp.mean(xc * xc, axis=-1, keepdims=True)
    return xc * jax.lax.rsqrt(var + eps) * g.astype(jnp.float32) + b.astype(jnp.float32)


def _encoder_layer_kernel(h_ref, wqkv_ref, bqkv_ref, wo_ref, bo_ref,
                          g1_ref, b1_ref, wi_ref, bi_ref, wf_ref, bf_ref,
                          g2_ref, b2_ref, o_ref, *, num_heads, eps):
    bb, S, A = h_ref.shape
    dh = A // num_heads
    scale = 1.0 / float(dh) ** 0.5

    h_in = h_ref[...].reshape(bb * S, A)
    h_f32 = h_in.astype(jnp.float32)

    # --- fused Q/K/V projection: one MXU matmul against the [A, 3A] weight ---
    qkv = jnp.dot(h_in, wqkv_ref[...], preferred_element_type=jnp.float32)
    qkv = qkv + bqkv_ref[...].astype(jnp.float32)          # [bb*S, 3A] f32

    # --- multi-head self-attention, entirely in VMEM (no HBM head transposes) ---
    # attention_mask is all ones in the reference -> additive mask of 0.0, omitted.
    ctx_heads = []
    for hh in range(num_heads):
        qh = qkv[:, 0 * A + hh * dh: 0 * A + (hh + 1) * dh].reshape(bb, S, dh)
        kh = qkv[:, 1 * A + hh * dh: 1 * A + (hh + 1) * dh].reshape(bb, S, dh)
        vh = qkv[:, 2 * A + hh * dh: 2 * A + (hh + 1) * dh].reshape(bb, S, dh)
        s = jnp.einsum("bqd,bkd->bqk", qh, kh,
                       preferred_element_type=jnp.float32) * scale
        s = s - jnp.max(s, axis=-1, keepdims=True)
        p = jnp.exp(s)
        p = p * pl.reciprocal(jnp.sum(p, axis=-1, keepdims=True), approx=True)
        ctx_heads.append(jnp.einsum("bqk,bkd->bqd", p, vh,
                                    preferred_element_type=jnp.float32))
    ctx = jnp.concatenate(ctx_heads, axis=-1).reshape(bb * S, A)

    # --- attention output projection + residual + LayerNorm1 (fused epilogue) ---
    wo = wo_ref[...]
    attn = jnp.dot(ctx.astype(wo.dtype), wo, preferred_element_type=jnp.float32)
    attn = attn + bo_ref[...].astype(jnp.float32)
    h1 = _layer_norm_f32(attn + h_f32, g1_ref[...], b1_ref[...], eps)

    # --- feed-forward (GELU) + residual + LayerNorm2 (fused) ---
    wi = wi_ref[...]
    inter = jnp.dot(h1.astype(wi.dtype), wi, preferred_element_type=jnp.float32)
    # TODO(synk): HF Bert uses exact (erf) GELU; tanh approximation used here.
    inter = jax.nn.gelu(inter + bi_ref[...].astype(jnp.float32), approximate=True)
    wf = wf_ref[...]
    ff = jnp.dot(inter.astype(wf.dtype), wf, preferred_element_type=jnp.float32)
    ff = ff + bf_ref[...].astype(jnp.float32)
    h2 = _layer_norm_f32(ff + h1, g2_ref[...], b2_ref[...], eps)

    o_ref[...] = h2.reshape(bb, S, A).astype(o_ref.dtype)


def encoder_layer(h, lyr, *, num_heads, eps):
    """One fused adapter-encoder layer; grid over batch, 'parallel' for megacore."""
    B, S, A = h.shape
    I = lyr["wi"].shape[1]

    def rep(shape):
        return pl.BlockSpec(shape, lambda b: (0,) * len(shape))

    return pl.pallas_call(
        functools.partial(_encoder_layer_kernel, num_heads=num_heads, eps=eps),
        grid=(B,),
        out_shape=jax.ShapeDtypeStruct((B, S, A), h.dtype),
        in_specs=[
            pl.BlockSpec((1, S, A), lambda b: (b, 0, 0)),
            rep((A, 3 * A)), rep((1, 3 * A)),
            rep((A, A)), rep((1, A)),
            rep((1, A)), rep((1, A)),
            rep((A, I)), rep((1, I)),
            rep((I, A)), rep((1, A)),
            rep((1, A)), rep((1, A)),
        ],
        out_specs=pl.BlockSpec((1, S, A), lambda b: (b, 0, 0)),
        compiler_params=pltpu.CompilerParams(
            dimension_semantics=("parallel",),
            vmem_limit_bytes=VMEM_LIMIT_BYTES),
    )(h, lyr["wqkv"], lyr["bqkv"], lyr["wo"], lyr["bo"],
      lyr["ln1_g"], lyr["ln1_b"], lyr["wi"], lyr["bi"],
      lyr["wf"], lyr["bf"], lyr["ln2_g"], lyr["ln2_b"])


# ----------------------------------------------------------------------------
# com_dense without materializing the [B, S, 2H] concat: y = a@w1 + b@w2 + bias
# ----------------------------------------------------------------------------
def _com_dense_kernel(a_ref, b_ref, w1_ref, w2_ref, bias_ref, o_ref):
    y = jnp.dot(a_ref[...], w1_ref[...], preferred_element_type=jnp.float32)
    y = y + jnp.dot(b_ref[...], w2_ref[...], preferred_element_type=jnp.float32)
    y = y + bias_ref[...].astype(jnp.float32)
    o_ref[...] = y.astype(o_ref.dtype)


def com_dense(a, b, w1, w2, bias, *, tm=256):
    M, H = a.shape
    N = w1.shape[1]
    tm = _pick_tile(M, tm)
    return pl.pallas_call(
        _com_dense_kernel,
        grid=(M // tm,),
        out_shape=jax.ShapeDtypeStruct((M, N), a.dtype),
        in_specs=[
            pl.BlockSpec((tm, H), lambda i: (i, 0)),
            pl.BlockSpec((tm, H), lambda i: (i, 0)),
            pl.BlockSpec((H, N), lambda i: (0, 0)),
            pl.BlockSpec((H, N), lambda i: (0, 0)),
            pl.BlockSpec((1, N), lambda i: (0, 0)),
        ],
        out_specs=pl.BlockSpec((tm, N), lambda i: (i, 0)),
        compiler_params=pltpu.CompilerParams(
            dimension_semantics=("parallel",),
            vmem_limit_bytes=VMEM_LIMIT_BYTES),
    )(a, b, w1, w2, bias.reshape(1, N))


# ----------------------------------------------------------------------------
# Classifier head: dense -> dropout(identity) -> out_proj in one tiny kernel
# ----------------------------------------------------------------------------
def _head_kernel(x_ref, wd_ref, bd_ref, wp_ref, bp_ref, o_ref):
    y = jnp.dot(x_ref[...], wd_ref[...], preferred_element_type=jnp.float32)
    y = y + bd_ref[...].astype(jnp.float32)
    # dropout is identity at inference
    wp = wp_ref[...]
    logits = jnp.dot(y.astype(wp.dtype), wp, preferred_element_type=jnp.float32)
    o_ref[...] = (logits + bp_ref[...].astype(jnp.float32)).astype(o_ref.dtype)


def classifier_head(x, dense_p, out_p):
    B, H = x.shape
    return pl.pallas_call(
        _head_kernel,
        grid=(1,),
        out_shape=jax.ShapeDtypeStruct((B, 1), x.dtype),
        in_specs=[
            pl.BlockSpec((B, H), lambda i: (0, 0)),
            pl.BlockSpec((H, H), lambda i: (0, 0)),
            pl.BlockSpec((1, H), lambda i: (0, 0)),
            pl.BlockSpec((H, 1), lambda i: (0, 0)),
            pl.BlockSpec((1, 1), lambda i: (0, 0)),
        ],
        out_specs=pl.BlockSpec((B, 1), lambda i: (0, 0)),
        compiler_params=pltpu.CompilerParams(vmem_limit_bytes=VMEM_LIMIT_BYTES),
    )(x, dense_p["w"], dense_p["b"].reshape(1, H),
      out_p["w"], out_p["b"].reshape(1, 1))


# ----------------------------------------------------------------------------
# Parameter init (deterministic, matches PyTorch module structure)
# ----------------------------------------------------------------------------
def _init_linear(key, din, dout, std):
    return {"w": jax.random.normal(key, (din, dout), jnp.float32) * std,
            "b": jnp.zeros((dout,), jnp.float32)}


def init_adapter(key, hidden_size, adapter_size, intermediate, num_layers):
    ks = jax.random.split(key, 2 + 6 * num_layers)
    ki = iter(ks)
    std_adapter = 0.0002      # adapter_initializer_range
    std_enc = 0.02            # initializer_range
    A = adapter_size
    params = {
        "down": _init_linear(next(ki), hidden_size, A, std_adapter),
        "up": _init_linear(next(ki), A, hidden_size, std_adapter),
        "layers": [],
    }
    for _ in range(num_layers):
        q = _init_linear(next(ki), A, A, std_enc)
        k = _init_linear(next(ki), A, A, std_enc)
        v = _init_linear(next(ki), A, A, std_enc)
        o = _init_linear(next(ki), A, A, std_enc)
        i_ = _init_linear(next(ki), A, intermediate, std_enc)
        f = _init_linear(next(ki), intermediate, A, std_enc)
        params["layers"].append({
            # fused QKV weight/bias (equivalent to three separate Linears)
            "wqkv": jnp.concatenate([q["w"], k["w"], v["w"]], axis=1),
            "bqkv": jnp.concatenate([q["b"], k["b"], v["b"]]).reshape(1, 3 * A),
            "wo": o["w"], "bo": o["b"].reshape(1, A),
            "wi": i_["w"], "bi": i_["b"].reshape(1, intermediate),
            "wf": f["w"], "bf": f["b"].reshape(1, A),
            "ln1_g": jnp.ones((1, A), jnp.float32),
            "ln1_b": jnp.zeros((1, A), jnp.float32),
            "ln2_g": jnp.ones((1, A), jnp.float32),
            "ln2_b": jnp.zeros((1, A), jnp.float32),
        })
    return params


def init_model(key, hidden_size, adapter_size, intermediate, num_layers, num_adapters):
    ks = jax.random.split(key, 4 + num_adapters)
    return {
        "adapters": [
            init_adapter(ks[i], hidden_size, adapter_size, intermediate, num_layers)
            for i in range(num_adapters)
        ],
        # com_dense (2H -> H) stored as two H x H halves so the forward pass
        # never materializes the [B, S, 2H] concatenation.
        "com_dense": {
            "w1": jax.random.normal(ks[-4], (hidden_size, hidden_size), jnp.float32) * 0.02,
            "w2": jax.random.normal(ks[-3], (hidden_size, hidden_size), jnp.float32) * 0.02,
            "b": jnp.zeros((hidden_size,), jnp.float32),
        },
        "dense": _init_linear(ks[-2], hidden_size, hidden_size, 0.02),
        "out_proj": _init_linear(ks[-1], hidden_size, 1, 0.02),
    }


# ----------------------------------------------------------------------------
# Forward pass
# ----------------------------------------------------------------------------
def adapter_forward(params, hidden_states, cfg):
    """Adapter: down_project -> fused BertEncoder layers -> up_project + residual."""
    B, S, H = hidden_states.shape
    A = cfg["adapter_size"]
    x2d = hidden_states.reshape(B * S, H)

    h = linear(x2d, params["down"]["w"], params["down"]["b"])          # [B*S, A]
    h = h.reshape(B, S, A)
    for lyr in params["layers"]:
        h = encoder_layer(h, lyr, num_heads=cfg["num_heads"], eps=cfg["ln_eps"])
    # up_project with the residual add fused into the kernel epilogue
    out = linear(h.reshape(B * S, A), params["up"]["w"], params["up"]["b"],
                 residual=x2d)
    return out.reshape(B, S, H)


def adapter_ensemble_forward(params, sequence_output, hidden_states, cfg):
    B, S, H = sequence_output.shape
    skip = cfg["adapter_skip_layers"]
    adapter_list = cfg["adapter_list"]

    hidden_states_last = jnp.zeros_like(sequence_output)
    adapter_hidden = []
    count = 0
    for i, ap in enumerate(params["adapters"]):
        fusion_state = hidden_states[adapter_list[i]] + hidden_states_last
        hidden_states_last = adapter_forward(ap, fusion_state, cfg)
        adapter_hidden.append(hidden_states_last)
        count += 1
        if skip >= 1 and count % skip == 0:
            # faithful to reference indexing: adapter_hidden_states[count / skip]
            hidden_states_last = hidden_states_last + adapter_hidden[count // skip]

    com = com_dense(
        sequence_output.reshape(B * S, H),
        hidden_states_last.reshape(B * S, H),
        params["com_dense"]["w1"], params["com_dense"]["w2"],
        params["com_dense"]["b"],
    ).reshape(B, S, H)

    squeezed = com[:, 0, :]                                            # [B, H]
    logits = classifier_head(squeezed, params["dense"], params["out_proj"])  # [B, 1]
    # reference returns (logits,) + outputs[2:]; hidden_states pass through unchanged
    return (logits,) + tuple(hidden_states)


# ----------------------------------------------------------------------------
# Main
# ----------------------------------------------------------------------------
if __name__ == "__main__":
    # Small synthetic config consistent with the module's structure.
    B, S, H = 2, 8, 32          # batch, seq, pretrained hidden size
    A, nH, I = 16, 2, 64        # adapter_size, attention heads, intermediate size
    num_enc_layers = 2          # adapter_transformer_layers
    adapter_list = [0, 2, 3]    # args.adapter_list
    num_hidden_states = 4       # len(outputs[2])
    cfg = dict(
        adapter_size=A,
        num_heads=nH,
        ln_eps=1e-5,
        adapter_list=adapter_list,
        adapter_skip_layers=0,  # args.adapter_skip_layers
    )

    root = jax.random.PRNGKey(0)
    k_params, k_seq, k_hs = jax.random.split(root, 3)

    params = init_model(k_params, H, A, I, num_enc_layers, len(adapter_list))

    sequence_output = jax.random.normal(k_seq, (B, S, H), jnp.float32)
    hs_keys = jax.random.split(k_hs, num_hidden_states)
    hidden_states = tuple(
        jax.random.normal(hs_keys[i], (B, S, H), jnp.float32)
        for i in range(num_hidden_states)
    )

    fwd = jax.jit(lambda p, so, hs: adapter_ensemble_forward(p, so, hs, cfg))
    outputs = fwd(params, sequence_output, hidden_states)
    logits = outputs[0]
    jax.block_until_ready(logits)
    assert logits.shape == (B, 1)
    print("KERNEL_OK")
</pallas_src>

<mosaic_0001>
module attributes {stable_mosaic.version = 11 : i64} {
  func.func @_linear_kernel(%arg0: i32, %arg1: i32, %arg2: i32, %arg3: memref<16x32xf32, #tpu.memory_space<vmem>>, %arg4: memref<32x16xf32, #tpu.memory_space<vmem>>, %arg5: memref<1x16xf32, #tpu.memory_space<vmem>>, %arg6: memref<16x16xf32, #tpu.memory_space<vmem>>, %arg7: memref<16x16xf32, #tpu.memory_space<vmem>>) attributes {dimension_semantics = [#tpu.dimension_semantics<parallel>, #tpu.dimension_semantics<parallel>, #tpu.dimension_semantics<arbitrary>], iteration_bounds = array<i64: 1, 1, 1>, scalar_prefetch = 0 : i64, scratch_operands = 1 : i64, tpu.core_type = #tpu.core_type<tc>, window_params = [{transform_indices = @transform_0, window_bounds = array<i64: 16, 32>}, {transform_indices = @transform_1, window_bounds = array<i64: 32, 16>}, {transform_indices = @transform_2, window_bounds = array<i64: 1, 16>}, {transform_indices = @transform_3, window_bounds = array<i64: 16, 16>}]} {
    %c0_i32 = arith.constant 0 : i32
    %0 = arith.cmpi eq, %arg2, %c0_i32 : i32
    %1 = arith.extui %0 : i1 to i32
    %c0_i32_0 = arith.constant 0 : i32
    %2 = arith.cmpi ne, %1, %c0_i32_0 : i32
    scf.if %2 {
      %cst_10 = arith.constant 0.000000e+00 : f32
      %12 = vector.broadcast %cst_10 : f32 to vector<16x16xf32>
      %c0_11 = arith.constant 0 : index
      %c0_12 = arith.constant 0 : index
      %13 = vector.load %arg7[%c0_11, %c0_12] : memref<16x16xf32, #tpu.memory_space<vmem>>, vector<16x16xf32>
      tpu.vector_store %arg7[%c0_11, %c0_12], %12 {strides = array<i32>} : memref<16x16xf32, #tpu.memory_space<vmem>>, vector<16x16xf32>,
    } else {
    }
    %c0 = arith.constant 0 : index
    %c0_1 = arith.constant 0 : index
    %3 = vector.load %arg7[%c0, %c0_1] : memref<16x16xf32, #tpu.memory_space<vmem>>, vector<16x16xf32>
    %c0_2 = arith.constant 0 : index
    %c0_3 = arith.constant 0 : index
    %4 = vector.load %arg3[%c0_2, %c0_3] : memref<16x32xf32, #tpu.memory_space<vmem>>, vector<16x32xf32>
    %c0_4 = arith.constant 0 : index
    %c0_5 = arith.constant 0 : index
    %5 = vector.load %arg4[%c0_4, %c0_5] : memref<32x16xf32, #tpu.memory_space<vmem>>, vector<32x16xf32>
    %cst = arith.constant dense<0.000000e+00> : vector<16x16xf32>
    %6 = tpu.matmul %4, %5, %cst {dimension_numbers = #tpu.dot_dimension_numbers<[1], [0], [0], [1], [0, 0, 1, 1], [], []>} : vector<16x32xf32>, vector<32x16xf32>, vector<16x16xf32> -> vector<16x16xf32>
    %7 = arith.addf %3, %6 : vector<16x16xf32>
    %c0_6 = arith.constant 0 : index
    %c0_7 = arith.constant 0 : index
    %8 = vector.load %arg7[%c0_6, %c0_7] : memref<16x16xf32, #tpu.memory_space<vmem>>, vector<16x16xf32>
    tpu.vector_store %arg7[%c0_6, %c0_7], %7 {strides = array<i32>} : memref<16x16xf32, #tpu.memory_space<vmem>>, vector<16x16xf32>,
    %c0_i32_8 = arith.constant 0 : i32
    %9 = arith.cmpi eq, %arg2, %c0_i32_8 : i32
    %10 = arith.extui %9 : i1 to i32
    %c0_i32_9 = arith.constant 0 : i32
    %11 = arith.cmpi ne, %10, %c0_i32_9 : i32
    scf.if %11 {
      %c0_10 = arith.constant 0 : index
      %c0_11 = arith.constant 0 : index
      %12 = vector.load %arg7[%c0_10, %c0_11] : memref<16x16xf32, #tpu.memory_space<vmem>>, vector<16x16xf32>
      %c0_12 = arith.constant 0 : index
      %c0_13 = arith.constant 0 : index
      %13 = vector.load %arg5[%c0_12, %c0_13] : memref<1x16xf32, #tpu.memory_space<vmem>>, vector<1x16xf32>
      %14 = vector.broadcast %13 : vector<1x16xf32> to vector<16x16xf32>
      %15 = arith.addf %12, %14 : vector<16x16xf32>
      %c0_14 = arith.constant 0 : index
      %c0_15 = arith.constant 0 : index
      %16 = vector.load %arg6[%c0_14, %c0_15] : memref<16x16xf32, #tpu.memory_space<vmem>>, vector<16x16xf32>
      tpu.vector_store %arg6[%c0_14, %c0_15], %15 {strides = array<i32>} : memref<16x16xf32, #tpu.memory_space<vmem>>, vector<16x16xf32>,
    } else {
    }
    return
  }
  func.func @transform_0(%arg0: i32, %arg1: i32, %arg2: i32) -> (i32, i32) {
    %c0_i32 = arith.constant 0 : i32
    return %arg0, %arg2 : i32, i32
  }
  func.func @transform_1(%arg0: i32, %arg1: i32, %arg2: i32) -> (i32, i32) {
    %c0_i32 = arith.constant 0 : i32
    return %arg2, %arg1 : i32, i32
  }
  func.func @transform_2(%arg0: i32, %arg1: i32, %arg2: i32) -> (i32, i32) {
    %c0_i32 = arith.constant 0 : i32
    %c0_i32_0 = arith.constant 0 : i32
    return %c0_i32, %arg1 : i32, i32
  }
  func.func @transform_3(%arg0: i32, %arg1: i32, %arg2: i32) -> (i32, i32) {
    %c0_i32 = arith.constant 0 : i32
    return %arg0, %arg1 : i32, i32
  }
}

module attributes {stable_mosaic.version = 11 : i64} {
  func.func @_encoder_layer_kernel(%arg0: i32, %arg1: memref<1x8x16xf32, #tpu.memory_space<vmem>>, %arg2: memref<16x48xf32, #tpu.memory_space<vmem>>, %arg3: memref<1x48xf32, #tpu.memory_space<vmem>>, %arg4: memref<16x16xf32, #tpu.memory_space<vmem>>, %arg5: memref<1x16xf32, #tpu.memory_space<vmem>>, %arg6: memref<1x16xf32, #tpu.memory_space<vmem>>, %arg7: memref<1x16xf32, #tpu.memory_space<vmem>>, %arg8: memref<16x64xf32, #tpu.memory_space<vmem>>, %arg9: memref<1x64xf32, #tpu.memory_space<vmem>>, %arg10: memref<64x16xf32, #tpu.memory_space<vmem>>, %arg11: memref<1x16xf32, #tpu.memory_space<vmem>>, %arg12: memref<1x16xf32, #tpu.memory_space<vmem>>, %arg13: memref<1x16xf32, #tpu.memory_space<vmem>>, %arg14: memref<1x8x16xf32, #tpu.memory_space<vmem>>) attributes {dimension_semantics = [#tpu.dimension_semantics<parallel>], iteration_bounds = array<i64: 2>, scalar_prefetch = 0 : i64, scratch_operands = 0 : i64, tpu.core_type = #tpu.core_type<tc>, window_params = [{transform_indices = @transform_0, window_bounds = array<i64: 1, 8, 16>}, {pipeline_mode = #tpu.pipeline_mode<synchronous>, transform_indices = @transform_1, window_bounds = array<i64: 16, 48>}, {pipeline_mode = #tpu.pipeline_mode<synchronous>, transform_indices = @transform_2, window_bounds = array<i64: 1, 48>}, {pipeline_mode = #tpu.pipeline_mode<synchronous>, transform_indices = @transform_3, window_bounds = array<i64: 16, 16>}, {pipeline_mode = #tpu.pipeline_mode<synchronous>, transform_indices = @transform_4, window_bounds = array<i64: 1, 16>}, {pipeline_mode = #tpu.pipeline_mode<synchronous>, transform_indices = @transform_5, window_bounds = array<i64: 1, 16>}, {pipeline_mode = #tpu.pipeline_mode<synchronous>, transform_indices = @transform_6, window_bounds = array<i64: 1, 16>}, {pipeline_mode = #tpu.pipeline_mode<synchronous>, transform_indices = @transform_7, window_bounds = array<i64: 16, 64>}, {pipeline_mode = #tpu.pipeline_mode<synchronous>, transform_indices = @transform_8, window_bounds = array<i64: 1, 64>}, {pipeline_mode = #tpu.pipeline_mode<synchronous>, transform_indices = @transform_9, window_bounds = array<i64: 64, 16>}, {pipeline_mode = #tpu.pipeline_mode<synchronous>, transform_indices = @transform_10, window_bounds = array<i64: 1, 16>}, {pipeline_mode = #tpu.pipeline_mode<synchronous>, transform_indices = @transform_11, window_bounds = array<i64: 1, 16>}, {pipeline_mode = #tpu.pipeline_mode<synchronous>, transform_indices = @transform_12, window_bounds = array<i64: 1, 16>}, {transform_indices = @transform_13, window_bounds = array<i64: 1, 8, 16>}]} {
    %c0 = arith.constant 0 : index
    %c0_0 = arith.constant 0 : index
    %c0_1 = arith.constant 0 : index
    %0 = vector.load %arg1[%c0, %c0_0, %c0_1] : memref<1x8x16xf32, #tpu.memory_space<vmem>>, vector<1x8x16xf32>
    %1 = vector.shape_cast %0 : vector<1x8x16xf32> to vector<8x16xf32>
    %c0_2 = arith.constant 0 : index
    %c0_3 = arith.constant 0 : index
    %2 = vector.load %arg2[%c0_2, %c0_3] : memref<16x48xf32, #tpu.memory_space<vmem>>, vector<16x48xf32>
    %cst = arith.constant dense<0.000000e+00> : vector<8x48xf32>
    %3 = tpu.matmul %1, %2, %cst {dimension_numbers = #tpu.dot_dimension_numbers<[1], [0], [0], [1], [0, 0, 1, 1], [], []>} : vector<8x16xf32>, vector<16x48xf32>, vector<8x48xf32> -> vector<8x48xf32>
    %c0_4 = arith.constant 0 : index
    %c0_5 = arith.constant 0 : index
    %4 = vector.load %arg3[%c0_4, %c0_5] : memref<1x48xf32, #tpu.memory_space<vmem>>, vector<1x48xf32>
    %5 = vector.broadcast %4 : vector<1x48xf32> to vector<8x48xf32>
    %6 = arith.addf %3, %5 : vector<8x48xf32>
    %7 = vector.extract_strided_slice %6 {offsets = [0, 0], sizes = [8, 8], strides = [1, 1]} : vector<8x48xf32> to vector<8x8xf32>
    %8 = vector.shape_cast %7 : vector<8x8xf32> to vector<1x8x8xf32>
    %9 = vector.extract_strided_slice %6 {offsets = [0, 16], sizes = [8, 8], strides = [1, 1]} : vector<8x48xf32> to vector<8x8xf32>
    %10 = vector.shape_cast %9 : vector<8x8xf32> to vector<1x8x8xf32>
    %11 = vector.extract_strided_slice %6 {offsets = [0, 32], sizes = [8, 8], strides = [1, 1]} : vector<8x48xf32> to vector<8x8xf32>
    %12 = vector.shape_cast %11 : vector<8x8xf32> to vector<1x8x8xf32>
    "tpu.trace_start"() <{level = 10 : i32, message = "bqd,bkd->bqk"}> : () -> ()
    %cst_6 = arith.constant dense<0.000000e+00> : vector<1x8x8xf32>
    %13 = tpu.matmul %8, %10, %cst_6 {dimension_numbers = #tpu.dot_dimension_numbers<[2], [2], [1], [1], [0, 0, 0, 1, 1, 1], [0], [0]>} : vector<1x8x8xf32>, vector<1x8x8xf32>, vector<1x8x8xf32> -> vector<1x8x8xf32>
    "tpu.trace_stop"() : () -> ()
    %cst_7 = arith.constant 0.353553385 : f32
    %14 = vector.broadcast %cst_7 : f32 to vector<1x8x8xf32>
    %15 = arith.mulf %13, %14 : vector<1x8x8xf32>
    %cst_8 = arith.constant dense<0xFF800000> : vector<1x8xf32>
    %16 = vector.multi_reduction <maximumf>, %15, %cst_8 [2] : vector<1x8x8xf32> to vector<1x8xf32>
    %17 = vector.shape_cast %16 : vector<1x8xf32> to vector<1x8x1xf32>
    %18 = vector.broadcast %17 : vector<1x8x1xf32> to vector<1x8x8xf32>
    %19 = arith.subf %15, %18 : vector<1x8x8xf32>
    %20 = math.exp %19 : vector<1x8x8xf32>
    %cst_9 = arith.constant dense<0.000000e+00> : vector<1x8xf32>
    %21 = vector.multi_reduction <add>, %20, %cst_9 [2] : vector<1x8x8xf32> to vector<1x8xf32>
    %22 = vector.shape_cast %21 : vector<1x8xf32> to vector<1x8x1xf32>
    %23 = tpu.reciprocal %22 {approx = true} : vector<1x8x1xf32> -> vector<1x8x1xf32>
    %24 = vector.broadcast %23 : vector<1x8x1xf32> to vector<1x8x8xf32>
    %25 = arith.mulf %20, %24 : vector<1x8x8xf32>
    "tpu.trace_start"() <{level = 10 : i32, message = "bqk,bkd->bqd"}> : () -> ()
    %cst_10 = arith.constant dense<0.000000e+00> : vector<1x8x8xf32>
    %26 = tpu.matmul %25, %12, %cst_10 {dimension_numbers = #tpu.dot_dimension_numbers<[2], [1], [1], [2], [0, 0, 0, 1, 1, 2], [0], [0]>} : vector<1x8x8xf32>, vector<1x8x8xf32>, vector<1x8x8xf32> -> vector<1x8x8xf32>
    "tpu.trace_stop"() : () -> ()
    %27 = vector.extract_strided_slice %6 {offsets = [0, 8], sizes = [8, 8], strides = [1, 1]} : vector<8x48xf32> to vector<8x8xf32>
    %28 = vector.shape_cast %27 : vector<8x8xf32> to vector<1x8x8xf32>
    %29 = vector.extract_strided_slice %6 {offsets = [0, 24], sizes = [8, 8], strides = [1, 1]} : vector<8x48xf32> to vector<8x8xf32>
    %30 = vector.shape_cast %29 : vector<8x8xf32> to vector<1x8x8xf32>
    %31 = vector.extract_strided_slice %6 {offsets = [0, 40], sizes = [8, 8], strides = [1, 1]} : vector<8x48xf32> to vector<8x8xf32>
    %32 = vector.shape_cast %31 : vector<8x8xf32> to vector<1x8x8xf32>
    "tpu.trace_start"() <{level = 10 : i32, message = "bqd,bkd->bqk"}> : () -> ()
    %cst_11 = arith.constant dense<0.000000e+00> : vector<1x8x8xf32>
    %33 = tpu.matmul %28, %30, %cst_11 {dimension_numbers = #tpu.dot_dimension_numbers<[2], [2], [1], [1], [0, 0, 0, 1, 1, 1], [0], [0]>} : vector<1x8x8xf32>, vector<1x8x8xf32>, vector<1x8x8xf32> -> vector<1x8x8xf32>
    "tpu.trace_stop"() : () -> ()
    %cst_12 = arith.constant 0.353553385 : f32
    %34 = vector.broadcast %cst_12 : f32 to vector<1x8x8xf32>
    %35 = arith.mulf %33, %34 : vector<1x8x8xf32>
    %cst_13 = arith.constant dense<0xFF800000> : vector<1x8xf32>
    %36 = vector.multi_reduction <maximumf>, %35, %cst_13 [2] : vector<1x8x8xf32> to vector<1x8xf32>
    %37 = vector.shape_cast %36 : vector<1x8xf32> to vector<1x8x1xf32>
    %38 = vector.broadcast %37 : vector<1x8x1xf32> to vector<1x8x8xf32>
    %39 = arith.subf %35, %38 : vector<1x8x8xf32>
    %40 = math.exp %39 : vector<1x8x8xf32>
    %cst_14 = arith.constant dense<0.000000e+00> : vector<1x8xf32>
    %41 = vector.multi_reduction <add>, %40, %cst_14 [2] : vector<1x8x8xf32> to vector<1x8xf32>
    %42 = vector.shape_cast %41 : vector<1x8xf32> to vector<1x8x1xf32>
    %43 = tpu.reciprocal %42 {approx = true} : vector<1x8x1xf32> -> vector<1x8x1xf32>
    %44 = vector.broadcast %43 : vector<1x8x1xf32> to vector<1x8x8xf32>
    %45 = arith.mulf %40, %44 : vector<1x8x8xf32>
    "tpu.trace_start"() <{level = 10 : i32, message = "bqk,bkd->bqd"}> : () -> ()
    %cst_15 = arith.constant dense<0.000000e+00> : vector<1x8x8xf32>
    %46 = tpu.matmul %45, %32, %cst_15 {dimension_numbers = #tpu.dot_dimension_numbers<[2], [1], [1], [2], [0, 0, 0, 1, 1, 2], [0], [0]>} : vector<1x8x8xf32>, vector<1x8x8xf32>, vector<1x8x8xf32> -> vector<1x8x8xf32>
    "tpu.trace_stop"() : () -> ()
    %47 = tpu.concatenate %26, %46 in 2 : vector<1x8x8xf32>, vector<1x8x8xf32> -> vector<1x8x16xf32>
    %48 = vector.shape_cast %47 : vector<1x8x16xf32> to vector<8x16xf32>
    %c0_16 = arith.constant 0 : index
    %c0_17 = arith.constant 0 : index
    %49 = vector.load %arg4[%c0_16, %c0_17] : memref<16x16xf32, #tpu.memory_space<vmem>>, vector<16x16xf32>
    %cst_18 = arith.constant dense<0.000000e+00> : vector<8x16xf32>
    %50 = tpu.matmul %48, %49, %cst_18 {dimension_numbers = #tpu.dot_dimension_numbers<[1], [0], [0], [1], [0, 0, 1, 1], [], []>} : vector<8x16xf32>, vector<16x16xf32>, vector<8x16xf32> -> vector<8x16xf32>
    %c0_19 = arith.constant 0 : index
    %c0_20 = arith.constant 0 : index
    %51 = vector.load %arg5[%c0_19, %c0_20] : memref<1x16xf32, #tpu.memory_space<vmem>>, vector<1x16xf32>
    %52 = vector.broadcast %51 : vector<1x16xf32> to vector<8x16xf32>
    %53 = arith.addf %50, %52 : vector<8x16xf32>
    %54 = arith.addf %53, %1 : vector<8x16xf32>
    %c0_21 = arith.constant 0 : index
    %c0_22 = arith.constant 0 : index
    %55 = vector.load %arg6[%c0_21, %c0_22] : memref<1x16xf32, #tpu.memory_space<vmem>>, vector<1x16xf32>
    %c0_23 = arith.constant 0 : index
    %c0_24 = arith.constant 0 : index
    %56 = vector.load %arg7[%c0_23, %c0_24] : memref<1x16xf32, #tpu.memory_space<vmem>>, vector<1x16xf32>
    %cst_25 = arith.constant dense<0.000000e+00> : vector<8xf32>
    %57 = vector.multi_reduction <add>, %54, %cst_25 [1] : vector<8x16xf32> to vector<8xf32>
    %58 = vector.shape_cast %57 : vector<8xf32> to vector<8x1xf32>
    %cst_26 = arith.constant 1.600000e+01 : f32
    %59 = vector.broadcast %cst_26 : f32 to vector<8x1xf32>
    %60 = arith.divf %58, %59 : vector<8x1xf32>
    %61 = vector.broadcast %60 : vector<8x1xf32> to vector<8x16xf32>
    %62 = arith.subf %54, %61 : vector<8x16xf32>
    %63 = arith.mulf %62, %62 : vector<8x16xf32>
    %cst_27 = arith.constant dense<0.000000e+00> : vector<8xf32>
    %64 = vector.multi_reduction <add>, %63, %cst_27 [1] : vector<8x16xf32> to vector<8xf32>
    %65 = vector.shape_cast %64 : vector<8xf32> to vector<8x1xf32>
    %cst_28 = arith.constant 1.600000e+01 : f32
    %66 = vector.broadcast %cst_28 : f32 to vector<8x1xf32>
    %67 = arith.divf %65, %66 : vector<8x1xf32>
    %cst_29 = arith.constant 9.99999974E-6 : f32
    %68 = vector.broadcast %cst_29 : f32 to vector<8x1xf32>
    %69 = arith.addf %67, %68 : vector<8x1xf32>
    %70 = math.rsqrt %69 : vector<8x1xf32>
    %71 = vector.broadcast %70 : vector<8x1xf32> to vector<8x16xf32>
    %72 = arith.mulf %62, %71 : vector<8x16xf32>
    %73 = vector.broadcast %55 : vector<1x16xf32> to vector<8x16xf32>
    %74 = arith.mulf %72, %73 : vector<8x16xf32>
    %75 = vector.broadcast %56 : vector<1x16xf32> to vector<8x16xf32>
    %76 = arith.addf %74, %75 : vector<8x16xf32>
    %c0_30 = arith.constant 0 : index
    %c0_31 = arith.constant 0 : index
    %77 = vector.load %arg8[%c0_30, %c0_31] : memref<16x64xf32, #tpu.memory_space<vmem>>, vector<16x64xf32>
    %cst_32 = arith.constant dense<0.000000e+00> : vector<8x64xf32>
    %78 = tpu.matmul %76, %77, %cst_32 {dimension_numbers = #tpu.dot_dimension_numbers<[1], [0], [0], [1], [0, 0, 1, 1], [], []>} : vector<8x16xf32>, vector<16x64xf32>, vector<8x64xf32> -> vector<8x64xf32>
    %c0_33 = arith.constant 0 : index
    %c0_34 = arith.constant 0 : index
    %79 = vector.load %arg9[%c0_33, %c0_34] : memref<1x64xf32, #tpu.memory_space<vmem>>, vector<1x64xf32>
    %80 = vector.broadcast %79 : vector<1x64xf32> to vector<8x64xf32>
    %81 = arith.addf %78, %80 : vector<8x64xf32>
    %82 = arith.mulf %81, %81 : vector<8x64xf32>
    %83 = arith.mulf %81, %82 : vector<8x64xf32>
    %cst_35 = arith.constant 4.471500e-02 : f32
    %84 = vector.broadcast %cst_35 : f32 to vector<8x64xf32>
    %85 = arith.mulf %84, %83 : vector<8x64xf32>
    %86 = arith.addf %81, %85 : vector<8x64xf32>
    %cst_36 = arith.constant 0.797884583 : f32
    %87 = vector.broadcast %cst_36 : f32 to vector<8x64xf32>
    %88 = arith.mulf %87, %86 : vector<8x64xf32>
    %89 = math.tanh %88 : vector<8x64xf32>
    %cst_37 = arith.constant 1.000000e+00 : f32
    %90 = vector.broadcast %cst_37 : f32 to vector<8x64xf32>
    %91 = arith.addf %90, %89 : vector<8x64xf32>
    %cst_38 = arith.constant 5.000000e-01 : f32
    %92 = vector.broadcast %cst_38 : f32 to vector<8x64xf32>
    %93 = arith.mulf %92, %91 : vector<8x64xf32>
    %94 = arith.mulf %81, %93 : vector<8x64xf32>
    %c0_39 = arith.constant 0 : index
    %c0_40 = arith.constant 0 : index
    %95 = vector.load %arg10[%c0_39, %c0_40] : memref<64x16xf32, #tpu.memory_space<vmem>>, vector<64x16xf32>
    %cst_41 = arith.constant dense<0.000000e+00> : vector<8x16xf32>
    %96 = tpu.matmul %94, %95, %cst_41 {dimension_numbers = #tpu.dot_dimension_numbers<[1], [0], [0], [1], [0, 0, 1, 1], [], []>} : vector<8x64xf32>, vector<64x16xf32>, vector<8x16xf32> -> vector<8x16xf32>
    %c0_42 = arith.constant 0 : index
    %c0_43 = arith.constant 0 : index
    %97 = vector.load %arg11[%c0_42, %c0_43] : memref<1x16xf32, #tpu.memory_space<vmem>>, vector<1x16xf32>
    %98 = vector.broadcast %97 : vector<1x16xf32> to vector<8x16xf32>
    %99 = arith.addf %96, %98 : vector<8x16xf32>
    %100 = arith.addf %99, %76 : vector<8x16xf32>
    %c0_44 = arith.constant 0 : index
    %c0_45 = arith.constant 0 : index
    %101 = vector.load %arg12[%c0_44, %c0_45] : memref<1x16xf32, #tpu.memory_space<vmem>>, vector<1x16xf32>
    %c0_46 = arith.constant 0 : index
    %c0_47 = arith.constant 0 : index
    %102 = vector.load %arg13[%c0_46, %c0_47] : memref<1x16xf32, #tpu.memory_space<vmem>>, vector<1x16xf32>
    %cst_48 = arith.constant dense<0.000000e+00> : vector<8xf32>
    %103 = vector.multi_reduction <add>, %100, %cst_48 [1] : vector<8x16xf32> to vector<8xf32>
    %104 = vector.shape_cast %103 : vector<8xf32> to vector<8x1xf32>
    %cst_49 = arith.constant 1.600000e+01 : f32
    %105 = vector.broadcast %cst_49 : f32 to vector<8x1xf32>
    %106 = arith.divf %104, %105 : vector<8x1xf32>
    %107 = vector.broadcast %106 : vector<8x1xf32> to vector<8x16xf32>
    %108 = arith.subf %100, %107 : vector<8x16xf32>
    %109 = arith.mulf %108, %108 : vector<8x16xf32>
    %cst_50 = arith.constant dense<0.000000e+00> : vector<8xf32>
    %110 = vector.multi_reduction <add>, %109, %cst_50 [1] : vector<8x16xf32> to vector<8xf32>
    %111 = vector.shape_cast %110 : vector<8xf32> to vector<8x1xf32>
    %cst_51 = arith.constant 1.600000e+01 : f32
    %112 = vector.broadcast %cst_51 : f32 to vector<8x1xf32>
    %113 = arith.divf %111, %112 : vector<8x1xf32>
    %cst_52 = arith.constant 9.99999974E-6 : f32
    %114 = vector.broadcast %cst_52 : f32 to vector<8x1xf32>
    %115 = arith.addf %113, %114 : vector<8x1xf32>
    %116 = math.rsqrt %115 : vector<8x1xf32>
    %117 = vector.broadcast %116 : vector<8x1xf32> to vector<8x16xf32>
    %118 = arith.mulf %108, %117 : vector<8x16xf32>
    %119 = vector.broadcast %101 : vector<1x16xf32> to vector<8x16xf32>
    %120 = arith.mulf %118, %119 : vector<8x16xf32>
    %121 = vector.broadcast %102 : vector<1x16xf32> to vector<8x16xf32>
    %122 = arith.addf %120, %121 : vector<8x16xf32>
    %123 = vector.shape_cast %122 : vector<8x16xf32> to vector<1x8x16xf32>
    %c0_53 = arith.constant 0 : index
    %c0_54 = arith.constant 0 : index
    %c0_55 = arith.constant 0 : index
    %124 = vector.load %arg14[%c0_53, %c0_54, %c0_55] : memref<1x8x16xf32, #tpu.memory_space<vmem>>, vector<1x8x16xf32>
    tpu.vector_store %arg14[%c0_53, %c0_54, %c0_55], %123 {strides = array<i32>} : memref<1x8x16xf32, #tpu.memory_space<vmem>>, vector<1x8x16xf32>,
    return
  }
  func.func @transform_0(%arg0: i32) -> (i32, i32, i32) {
    %c0_i32 = arith.constant 0 : i32
    %c0_i32_0 = arith.constant 0 : i32
    %c0_i32_1 = arith.constant 0 : i32
    return %arg0, %c0_i32, %c0_i32_0 : i32, i32, i32
  }
  func.func @transform_1(%arg0: i32) -> (i32, i32) {
    %c0_i32 = arith.constant 0 : i32
    %c0_i32_0 = arith.constant 0 : i32
    %c0_i32_1 = arith.constant 0 : i32
    return %c0_i32, %c0_i32_0 : i32, i32
  }
  func.func @transform_2(%arg0: i32) -> (i32, i32) {
    %c0_i32 = arith.constant 0 : i32
    %c0_i32_0 = arith.constant 0 : i32
    %c0_i32_1 = arith.constant 0 : i32
    return %c0_i32, %c0_i32_0 : i32, i32
  }
  func.func @transform_3(%arg0: i32) -> (i32, i32) {
    %c0_i32 = arith.constant 0 : i32
    %c0_i32_0 = arith.constant 0 : i32
    %c0_i32_1 = arith.constant 0 : i32
    return %c0_i32, %c0_i32_0 : i32, i32
  }
  func.func @transform_4(%arg0: i32) -> (i32, i32) {
    %c0_i32 = arith.constant 0 : i32
    %c0_i32_0 = arith.constant 0 : i32
    %c0_i32_1 = arith.constant 0 : i32
    return %c0_i32, %c0_i32_0 : i32, i32
  }
  func.func @transform_5(%arg0: i32) -> (i32, i32) {
    %c0_i32 = arith.constant 0 : i32
    %c0_i32_0 = arith.constant 0 : i32
    %c0_i32_1 = arith.constant 0 : i32
    return %c0_i32, %c0_i32_0 : i32, i32
  }
  func.func @transform_6(%arg0: i32) -> (i32, i32) {
    %c0_i32 = arith.constant 0 : i32
    %c0_i32_0 = arith.constant 0 : i32
    %c0_i32_1 = arith.constant 0 : i32
    return %c0_i32, %c0_i32_0 : i32, i32
  }
  func.func @transform_7(%arg0: i32) -> (i32, i32) {
    %c0_i32 = arith.constant 0 : i32
    %c0_i32_0 = arith.constant 0 : i32
    %c0_i32_1 = arith.constant 0 : i32
    return %c0_i32, %c0_i32_0 : i32, i32
  }
  func.func @transform_8(%arg0: i32) -> (i32, i32) {
    %c0_i32 = arith.constant 0 : i32
    %c0_i32_0 = arith.constant 0 : i32
    %c0_i32_1 = arith.constant 0 : i32
    return %c0_i32, %c0_i32_0 : i32, i32
  }
  func.func @transform_9(%arg0: i32) -> (i32, i32) {
    %c0_i32 = arith.constant 0 : i32
    %c0_i32_0 = arith.constant 0 : i32
    %c0_i32_1 = arith.constant 0 : i32
    return %c0_i32, %c0_i32_0 : i32, i32
  }
  func.func @transform_10(%arg0: i32) -> (i32, i32) {
    %c0_i32 = arith.constant 0 : i32
    %c0_i32_0 = arith.constant 0 : i32
    %c0_i32_1 = arith.constant 0 : i32
    return %c0_i32, %c0_i32_0 : i32, i32
  }
  func.func @transform_11(%arg0: i32) -> (i32, i32) {
    %c0_i32 = arith.constant 0 : i32
    %c0_i32_0 = arith.constant 0 : i32
    %c0_i32_1 = arith.constant 0 : i32
    return %c0_i32, %c0_i32_0 : i32, i32
  }
  func.func @transform_12(%arg0: i32) -> (i32, i32) {
    %c0_i32 = arith.constant 0 : i32
    %c0_i32_0 = arith.constant 0 : i32
    %c0_i32_1 = arith.constant 0 : i32
    return %c0_i32, %c0_i32_0 : i32, i32
  }
  func.func @transform_13(%arg0: i32) -> (i32, i32, i32) {
    %c0_i32 = arith.constant 0 : i32
    %c0_i32_0 = arith.constant 0 : i32
    %c0_i32_1 = arith.constant 0 : i32
    return %arg0, %c0_i32, %c0_i32_0 : i32, i32, i32
  }
}

module attributes {stable_mosaic.version = 11 : i64} {
  func.func @_linear_kernel(%arg0: i32, %arg1: i32, %arg2: i32, %arg3: memref<16x16xf32, #tpu.memory_space<vmem>>, %arg4: memref<16x32xf32, #tpu.memory_space<vmem>>, %arg5: memref<1x32xf32, #tpu.memory_space<vmem>>, %arg6: memref<16x32xf32, #tpu.memory_space<vmem>>, %arg7: memref<16x32xf32, #tpu.memory_space<vmem>>, %arg8: memref<16x32xf32, #tpu.memory_space<vmem>>) attributes {dimension_semantics = [#tpu.dimension_semantics<parallel>, #tpu.dimension_semantics<parallel>, #tpu.dimension_semantics<arbitrary>], iteration_bounds = array<i64: 1, 1, 1>, scalar_prefetch = 0 : i64, scratch_operands = 1 : i64, tpu.core_type = #tpu.core_type<tc>, window_params = [{transform_indices = @transform_0, window_bounds = array<i64: 16, 16>}, {transform_indices = @transform_1, window_bounds = array<i64: 16, 32>}, {transform_indices = @transform_2, window_bounds = array<i64: 1, 32>}, {transform_indices = @transform_3, window_bounds = array<i64: 16, 32>}, {transform_indices = @transform_4, window_bounds = array<i64: 16, 32>}]} {
    %c0_i32 = arith.constant 0 : i32
    %0 = arith.cmpi eq, %arg2, %c0_i32 : i32
    %1 = arith.extui %0 : i1 to i32
    %c0_i32_0 = arith.constant 0 : i32
    %2 = arith.cmpi ne, %1, %c0_i32_0 : i32
    scf.if %2 {
      %cst_10 = arith.constant 0.000000e+00 : f32
      %12 = vector.broadcast %cst_10 : f32 to vector<16x32xf32>
      %c0_11 = arith.constant 0 : index
      %c0_12 = arith.constant 0 : index
      %13 = vector.load %arg8[%c0_11, %c0_12] : memref<16x32xf32, #tpu.memory_space<vmem>>, vector<16x32xf32>
      tpu.vector_store %arg8[%c0_11, %c0_12], %12 {strides = array<i32>} : memref<16x32xf32, #tpu.memory_space<vmem>>, vector<16x32xf32>,
    } else {
    }
    %c0 = arith.constant 0 : index
    %c0_1 = arith.constant 0 : index
    %3 = vector.load %arg8[%c0, %c0_1] : memref<16x32xf32, #tpu.memory_space<vmem>>, vector<16x32xf32>
    %c0_2 = arith.constant 0 : index
    %c0_3 = arith.constant 0 : index
    %4 = vector.load %arg3[%c0_2, %c0_3] : memref<16x16xf32, #tpu.memory_space<vmem>>, vector<16x16xf32>
    %c0_4 = arith.constant 0 : index
    %c0_5 = arith.constant 0 : index
    %5 = vector.load %arg4[%c0_4, %c0_5] : memref<16x32xf32, #tpu.memory_space<vmem>>, vector<16x32xf32>
    %cst = arith.constant dense<0.000000e+00> : vector<16x32xf32>
    %6 = tpu.matmul %4, %5, %cst {dimension_numbers = #tpu.dot_dimension_numbers<[1], [0], [0], [1], [0, 0, 1, 1], [], []>} : vector<16x16xf32>, vector<16x32xf32>, vector<16x32xf32> -> vector<16x32xf32>
    %7 = arith.addf %3, %6 : vector<16x32xf32>
    %c0_6 = arith.constant 0 : index
    %c0_7 = arith.constant 0 : index
    %8 = vector.load %arg8[%c0_6, %c0_7] : memref<16x32xf32, #tpu.memory_space<vmem>>, vector<16x32xf32>
    tpu.vector_store %arg8[%c0_6, %c0_7], %7 {strides = array<i32>} : memref<16x32xf32, #tpu.memory_space<vmem>>, vector<16x32xf32>,
    %c0_i32_8 = arith.constant 0 : i32
    %9 = arith.cmpi eq, %arg2, %c0_i32_8 : i32
    %10 = arith.extui %9 : i1 to i32
    %c0_i32_9 = arith.constant 0 : i32
    %11 = arith.cmpi ne, %10, %c0_i32_9 : i32
    scf.if %11 {
      %c0_10 = arith.constant 0 : index
      %c0_11 = arith.constant 0 : index
      %12 = vector.load %arg8[%c0_10, %c0_11] : memref<16x32xf32, #tpu.memory_space<vmem>>, vector<16x32xf32>
      %c0_12 = arith.constant 0 : index
      %c0_13 = arith.constant 0 : index
      %13 = vector.load %arg5[%c0_12, %c0_13] : memref<1x32xf32, #tpu.memory_space<vmem>>, vector<1x32xf32>
      %14 = vector.broadcast %13 : vector<1x32xf32> to vector<16x32xf32>
      %15 = arith.addf %12, %14 : vector<16x32xf32>
      %c0_14 = arith.constant 0 : index
      %c0_15 = arith.constant 0 : index
      %16 = vector.load %arg6[%c0_14, %c0_15] : memref<16x32xf32, #tpu.memory_space<vmem>>, vector<16x32xf32>
      %17 = arith.addf %15, %16 : vector<16x32xf32>
      %c0_16 = arith.constant 0 : index
      %c0_17 = arith.constant 0 : index
      %18 = vector.load %arg7[%c0_16, %c0_17] : memref<16x32xf32, #tpu.memory_space<vmem>>, vector<16x32xf32>
      tpu.vector_store %arg7[%c0_16, %c0_17], %17 {strides = array<i32>} : memref<16x32xf32, #tpu.memory_space<vmem>>, vector<16x32xf32>,
    } else {
    }
    return
  }
  func.func @transform_0(%arg0: i32, %arg1: i32, %arg2: i32) -> (i32, i32) {
    %c0_i32 = arith.constant 0 : i32
    return %arg0, %arg2 : i32, i32
  }
  func.func @transform_1(%arg0: i32, %arg1: i32, %arg2: i32) -> (i32, i32) {
    %c0_i32 = arith.constant 0 : i32
    return %arg2, %arg1 : i32, i32
  }
  func.func @transform_2(%arg0: i32, %arg1: i32, %arg2: i32) -> (i32, i32) {
    %c0_i32 = arith.constant 0 : i32
    %c0_i32_0 = arith.constant 0 : i32
    return %c0_i32, %arg1 : i32, i32
  }
  func.func @transform_3(%arg0: i32, %arg1: i32, %arg2: i32) -> (i32, i32) {
    %c0_i32 = arith.constant 0 : i32
    return %arg0, %arg1 : i32, i32
  }
  func.func @transform_4(%arg0: i32, %arg1: i32, %arg2: i32) -> (i32, i32) {
    %c0_i32 = arith.constant 0 : i32
    return %arg0, %arg1 : i32, i32
  }
}

module attributes {stable_mosaic.version = 11 : i64} {
  func.func @_com_dense_kernel(%arg0: i32, %arg1: memref<16x32xf32, #tpu.memory_space<vmem>>, %arg2: memref<16x32xf32, #tpu.memory_space<vmem>>, %arg3: memref<32x32xf32, #tpu.memory_space<vmem>>, %arg4: memref<32x32xf32, #tpu.memory_space<vmem>>, %arg5: memref<1x32xf32, #tpu.memory_space<vmem>>, %arg6: memref<16x32xf32, #tpu.memory_space<vmem>>) attributes {dimension_semantics = [#tpu.dimension_semantics<parallel>], iteration_bounds = array<i64: 1>, scalar_prefetch = 0 : i64, scratch_operands = 0 : i64, tpu.core_type = #tpu.core_type<tc>, window_params = [{transform_indices = @transform_0, window_bounds = array<i64: 16, 32>}, {transform_indices = @transform_1, window_bounds = array<i64: 16, 32>}, {pipeline_mode = #tpu.pipeline_mode<synchronous>, transform_indices = @transform_2, window_bounds = array<i64: 32, 32>}, {pipeline_mode = #tpu.pipeline_mode<synchronous>, transform_indices = @transform_3, window_bounds = array<i64: 32, 32>}, {pipeline_mode = #tpu.pipeline_mode<synchronous>, transform_indices = @transform_4, window_bounds = array<i64: 1, 32>}, {transform_indices = @transform_5, window_bounds = array<i64: 16, 32>}]} {
    %c0 = arith.constant 0 : index
    %c0_0 = arith.constant 0 : index
    %0 = vector.load %arg1[%c0, %c0_0] : memref<16x32xf32, #tpu.memory_space<vmem>>, vector<16x32xf32>
    %c0_1 = arith.constant 0 : index
    %c0_2 = arith.constant 0 : index
    %1 = vector.load %arg3[%c0_1, %c0_2] : memref<32x32xf32, #tpu.memory_space<vmem>>, vector<32x32xf32>
    %cst = arith.constant dense<0.000000e+00> : vector<16x32xf32>
    %2 = tpu.matmul %0, %1, %cst {dimension_numbers = #tpu.dot_dimension_numbers<[1], [0], [0], [1], [0, 0, 1, 1], [], []>} : vector<16x32xf32>, vector<32x32xf32>, vector<16x32xf32> -> vector<16x32xf32>
    %c0_3 = arith.constant 0 : index
    %c0_4 = arith.constant 0 : index
    %3 = vector.load %arg2[%c0_3, %c0_4] : memref<16x32xf32, #tpu.memory_space<vmem>>, vector<16x32xf32>
    %c0_5 = arith.constant 0 : index
    %c0_6 = arith.constant 0 : index
    %4 = vector.load %arg4[%c0_5, %c0_6] : memref<32x32xf32, #tpu.memory_space<vmem>>, vector<32x32xf32>
    %cst_7 = arith.constant dense<0.000000e+00> : vector<16x32xf32>
    %5 = tpu.matmul %3, %4, %cst_7 {dimension_numbers = #tpu.dot_dimension_numbers<[1], [0], [0], [1], [0, 0, 1, 1], [], []>} : vector<16x32xf32>, vector<32x32xf32>, vector<16x32xf32> -> vector<16x32xf32>
    %6 = arith.addf %2, %5 : vector<16x32xf32>
    %c0_8 = arith.constant 0 : index
    %c0_9 = arith.constant 0 : index
    %7 = vector.load %arg5[%c0_8, %c0_9] : memref<1x32xf32, #tpu.memory_space<vmem>>, vector<1x32xf32>
    %8 = vector.broadcast %7 : vector<1x32xf32> to vector<16x32xf32>
    %9 = arith.addf %6, %8 : vector<16x32xf32>
    %c0_10 = arith.constant 0 : index
    %c0_11 = arith.constant 0 : index
    %10 = vector.load %arg6[%c0_10, %c0_11] : memref<16x32xf32, #tpu.memory_space<vmem>>, vector<16x32xf32>
    tpu.vector_store %arg6[%c0_10, %c0_11], %9 {strides = array<i32>} : memref<16x32xf32, #tpu.memory_space<vmem>>, vector<16x32xf32>,
    return
  }
  func.func @transform_0(%arg0: i32) -> (i32, i32) {
    %c0_i32 = arith.constant 0 : i32
    %c0_i32_0 = arith.constant 0 : i32
    return %arg0, %c0_i32 : i32, i32
  }
  func.func @transform_1(%arg0: i32) -> (i32, i32) {
    %c0_i32 = arith.constant 0 : i32
    %c0_i32_0 = arith.constant 0 : i32
    return %arg0, %c0_i32 : i32, i32
  }
  func.func @transform_2(%arg0: i32) -> (i32, i32) {
    %c0_i32 = arith.constant 0 : i32
    %c0_i32_0 = arith.constant 0 : i32
    %c0_i32_1 = arith.constant 0 : i32
    return %c0_i32, %c0_i32_0 : i32, i32
  }
  func.func @transform_3(%arg0: i32) -> (i32, i32) {
    %c0_i32 = arith.constant 0 : i32
    %c0_i32_0 = arith.constant 0 : i32
    %c0_i32_1 = arith.constant 0 : i32
    return %c0_i32, %c0_i32_0 : i32, i32
  }
  func.func @transform_4(%arg0: i32) -> (i32, i32) {
    %c0_i32 = arith.constant 0 : i32
    %c0_i32_0 = arith.constant 0 : i32
    %c0_i32_1 = arith.constant 0 : i32
    return %c0_i32, %c0_i32_0 : i32, i32
  }
  func.func @transform_5(%arg0: i32) -> (i32, i32) {
    %c0_i32 = arith.constant 0 : i32
    %c0_i32_0 = arith.constant 0 : i32
    return %arg0, %c0_i32 : i32, i32
  }
}

module attributes {stable_mosaic.version = 11 : i64} {
  func.func @_head_kernel(%arg0: i32, %arg1: memref<2x32xf32, #tpu.memory_space<vmem>>, %arg2: memref<32x32xf32, #tpu.memory_space<vmem>>, %arg3: memref<1x32xf32, #tpu.memory_space<vmem>>, %arg4: memref<32x1xf32, #tpu.memory_space<vmem>>, %arg5: memref<1x1xf32, #tpu.memory_space<vmem>>, %arg6: memref<2x1xf32, #tpu.memory_space<vmem>>) attributes {dimension_semantics = [#tpu.dimension_semantics<arbitrary>], iteration_bounds = array<i64: 1>, scalar_prefetch = 0 : i64, scratch_operands = 0 : i64, tpu.core_type = #tpu.core_type<tc>, window_params = [{pipeline_mode = #tpu.pipeline_mode<synchronous>, transform_indices = @transform_0, window_bounds = array<i64: 2, 32>}, {pipeline_mode = #tpu.pipeline_mode<synchronous>, transform_indices = @transform_1, window_bounds = array<i64: 32, 32>}, {pipeline_mode = #tpu.pipeline_mode<synchronous>, transform_indices = @transform_2, window_bounds = array<i64: 1, 32>}, {pipeline_mode = #tpu.pipeline_mode<synchronous>, transform_indices = @transform_3, window_bounds = array<i64: 32, 1>}, {pipeline_mode = #tpu.pipeline_mode<synchronous>, transform_indices = @transform_4, window_bounds = array<i64: 1, 1>}, {pipeline_mode = #tpu.pipeline_mode<synchronous>, transform_indices = @transform_5, window_bounds = array<i64: 2, 1>}]} {
    %c0 = arith.constant 0 : index
    %c0_0 = arith.constant 0 : index
    %0 = vector.load %arg1[%c0, %c0_0] : memref<2x32xf32, #tpu.memory_space<vmem>>, vector<2x32xf32>
    %c0_1 = arith.constant 0 : index
    %c0_2 = arith.constant 0 : index
    %1 = vector.load %arg2[%c0_1, %c0_2] : memref<32x32xf32, #tpu.memory_space<vmem>>, vector<32x32xf32>
    %cst = arith.constant dense<0.000000e+00> : vector<2x32xf32>
    %2 = tpu.matmul %0, %1, %cst {dimension_numbers = #tpu.dot_dimension_numbers<[1], [0], [0], [1], [0, 0, 1, 1], [], []>} : vector<2x32xf32>, vector<32x32xf32>, vector<2x32xf32> -> vector<2x32xf32>
    %c0_3 = arith.constant 0 : index
    %c0_4 = arith.constant 0 : index
    %3 = vector.load %arg3[%c0_3, %c0_4] : memref<1x32xf32, #tpu.memory_space<vmem>>, vector<1x32xf32>
    %4 = vector.broadcast %3 : vector<1x32xf32> to vector<2x32xf32>
    %5 = arith.addf %2, %4 : vector<2x32xf32>
    %c0_5 = arith.constant 0 : index
    %c0_6 = arith.constant 0 : index
    %6 = vector.load %arg4[%c0_5, %c0_6] : memref<32x1xf32, #tpu.memory_space<vmem>>, vector<32x1xf32>
    %cst_7 = arith.constant dense<0.000000e+00> : vector<2x1xf32>
    %7 = tpu.matmul %5, %6, %cst_7 {dimension_numbers = #tpu.dot_dimension_numbers<[1], [0], [0], [1], [0, 0, 1, 1], [], []>} : vector<2x32xf32>, vector<32x1xf32>, vector<2x1xf32> -> vector<2x1xf32>
    %c0_8 = arith.constant 0 : index
    %c0_9 = arith.constant 0 : index
    %8 = vector.load %arg5[%c0_8, %c0_9] : memref<1x1xf32, #tpu.memory_space<vmem>>, vector<1x1xf32>
    %9 = vector.broadcast %8 : vector<1x1xf32> to vector<2x1xf32>
    %10 = arith.addf %7, %9 : vector<2x1xf32>
    %c0_10 = arith.constant 0 : index
    %c0_11 = arith.constant 0 : index
    %11 = vector.load %arg6[%c0_10, %c0_11] : memref<2x1xf32, #tpu.memory_space<vmem>>, vector<2x1xf32>
    tpu.vector_store %arg6[%c0_10, %c0_11], %10 {strides = array<i32>} : memref<2x1xf32, #tpu.memory_space<vmem>>, vector<2x1xf32>,
    return
  }
  func.func @transform_0(%arg0: i32) -> (i32, i32) {
    %c0_i32 = arith.constant 0 : i32
    %c0_i32_0 = arith.constant 0 : i32
    %c0_i32_1 = arith.constant 0 : i32
    return %c0_i32, %c0_i32_0 : i32, i32
  }
  func.func @transform_1(%arg0: i32) -> (i32, i32) {
    %c0_i32 = arith.constant 0 : i32
    %c0_i32_0 = arith.constant 0 : i32
    %c0_i32_1 = arith.constant 0 : i32
    return %c0_i32, %c0_i32_0 : i32, i32
  }
  func.func @transform_2(%arg0: i32) -> (i32, i32) {
    %c0_i32 = arith.constant 0 : i32
    %c0_i32_0 = arith.constant 0 : i32
    %c0_i32_1 = arith.constant 0 : i32
    return %c0_i32, %c0_i32_0 : i32, i32
  }
  func.func @transform_3(%arg0: i32) -> (i32, i32) {
    %c0_i32 = arith.constant 0 : i32
    %c0_i32_0 = arith.constant 0 : i32
    %c0_i32_1 = arith.constant 0 : i32
    return %c0_i32, %c0_i32_0 : i32, i32
  }
  func.func @transform_4(%arg0: i32) -> (i32, i32) {
    %c0_i32 = arith.constant 0 : i32
    %c0_i32_0 = arith.constant 0 : i32
    %c0_i32_1 = arith.constant 0 : i32
    return %c0_i32, %c0_i32_0 : i32, i32
  }
  func.func @transform_5(%arg0: i32) -> (i32, i32) {
    %c0_i32 = arith.constant 0 : i32
    %c0_i32_0 = arith.constant 0 : i32
    %c0_i32_1 = arith.constant 0 : i32
    return %c0_i32, %c0_i32_0 : i32, i32
  }
}

</mosaic_0001>

<bundles_post_ra>
// kernel: _lambda_.14
= control target key start
LH: loop header
LB: loop body
LE: loop exit
PB: predicated region body
PF: predicated region fallthrough
CT: control target
= control target key end

     0   :  { %vm29_vm0 = vcmask 261120   ;;  %vm18_vm1 = vcmask 130048   ;;  %v165_v3 = vmov 0.0   ;;  %s221_s1 = inlined_call_operand.vmem [shape: f32[32,16], index: 1, kind: input, shape index: {}]   ;;  %s222_s0 = inlined_call_operand.vmem [shape: f32[16,32], index: 0, kind: input, shape index: {}]   ;;  %s223_s2 = inlined_call_operand.vmem [shape: f32[1,16], index: 2, kind: input, shape index: {}]   ;;  %s224_s3 = inlined_call_operand.vmem [shape: f32[16,16], index: 3, kind: output, shape index: {}]  }
   0x1   :  { %v25_v0 = vld [vmem:[%s221_s1] sm:$0xff]  ;;  %v26_v1 = vld [vmem:[%s221_s1 + $0x8] sm:$0xff]  ;;  %v27_v2 = vld [vmem:[%s221_s1 + $0x10] sm:$0xff]  ;;  %20 = vst.msk [vmem:[#allocation2 + $0x8] sm:$0xff] %vm18_vm1, %v165_v3 }
   0x2   :  { %19 = vst.msk [vmem:[#allocation2] sm:$0xff] %vm18_vm1, %v165_v3  ;;  %v156_v4 = vpack.c.bf16 %v26_v1, %v25_v0  ;;  %v28_v5 = vld [vmem:[%s221_s1 + $0x18] sm:$0xff]  ;;  %v23_v6 = vld [vmem:[%s222_s0] sm:$0xff]  ;;  %v24_v8 = vld [vmem:[%s222_s0 + $0x8] sm:$0xff] }
   0x3   :  { %v160_v7 = vpack.c.bf16 %v28_v5, %v27_v2  ;;  %153 = vmatprep.mubr.msk.f32.mxu0 %vm29_vm0, %v23_v6  ;;  %v138_v15 = vld [vmem:[%s223_s2] ss:$0 sm:$0xff] }
   0x4   :  { %157 = vmatprep.subr.bf16.mxu0 %v156_v4 }
   0x5   :  { %159 = vmatpush3.bf16.msra.mxu0 %v156_v4 }
   0x6   :  { %161 = vmatprep.subr.bf16.mxu0 %v160_v7 }
   0x8   :  { %v22_v9 = vld [vmem:[#allocation2 + $0x8] sm:$0xff] }
   0x9   :  { %163 = vmatpush3.bf16.msra.mxu0 %v160_v7  ;;  %v21_v10 = vld [vmem:[#allocation2] sm:$0xff] }
   0xc   :  { %154 = vmatmul.mubr.msk.f32.vlgmr.msra.gmra.mrb[0].mxu0 %vm29_vm0, %v24_v8 }
  0xdf   :  { %v155_v11 = vpop.f32.mrb[0].mxu0 }
  0xe0   :  { %v112_v12 = vadd.f32 %v155_v11, %v22_v9  ;;  %v102_v13 = vpop.f32.mrb[1].mxu0 }
  0xe1   :  { %v111_v14 = vadd.f32 %v102_v13, %v21_v10 }
  0xe2   :  { %115 = vst.msk [vmem:[#allocation2 + $0x8] sm:$0xff] %vm18_vm1, %v112_v12 }
  0xe3   :  { %114 = vst.msk [vmem:[#allocation2] sm:$0xff] %vm18_vm1, %v111_v14 }
  0xe9   :  { %v120_v16 = vld [vmem:[#allocation2 + $0x8] sm:$0xff] }
  0xea   :  { %v129_v17 = vadd.f32 %v138_v15, %v120_v16  ;;  %v119_v18 = vld [vmem:[#allocation2] sm:$0xff] }
  0xeb   :  { %v128_v19 = vadd.f32 %v138_v15, %v119_v18 }
  0xec   :  { %131 = vst.msk [vmem:[%s224_s3 + $0x8] sm:$0xff] %vm18_vm1, %v129_v17 }
  0xed   :  { %130 = vst.msk [vmem:[%s224_s3] sm:$0xff] %vm18_vm1, %v128_v19 }

// kernel: _lambda_.17
= control target key start
LH: loop header
LB: loop body
LE: loop exit
PB: predicated region body
PF: predicated region fallthrough
CT: control target
= control target key end

     0   :  { %vm30_vm0 = vcmask 130048   ;;  %vm21_vm1 = vcmask 261120   ;;  %v160_v3 = vmov 0.0   ;;  %s219_s1 = inlined_call_operand.vmem [shape: f32[16,32], index: 1, kind: input, shape index: {}]   ;;  %s220_s0 = inlined_call_operand.vmem [shape: f32[16,16], index: 0, kind: input, shape index: {}]   ;;  %s221_s2 = inlined_call_operand.vmem [shape: f32[1,32], index: 2, kind: input, shape index: {}]   ;;  %s222_s3 = inlined_call_operand.vmem [shape: f32[16,32], index: 3, kind: input, shape index: {}]   ;;  %s223_s4 = inlined_call_operand.vmem [shape: f32[16,32], index: 4, kind: output, shape index: {}]  }
   0x1   :  { %v28_v0 = vld [vmem:[%s219_s1] sm:$0xff]  ;;  %v29_v1 = vld [vmem:[%s219_s1 + $0x8] sm:$0xff]  ;;  %23 = vst.msk [vmem:[#allocation2 + $0x8] sm:$0xff] %vm21_vm1, %v160_v3  ;;  %22 = vst.msk [vmem:[#allocation2] sm:$0xff] %vm21_vm1, %v160_v3 }
   0x2   :  { %v26_v2 = vld [vmem:[%s220_s0] sm:$0xff]  ;;  %v155_v4 = vpack.c.bf16 %v29_v1, %v28_v0  ;;  %v27_v5 = vld [vmem:[%s220_s0 + $0x8] sm:$0xff] }
   0x3   :  { %152 = vmatprep.mubr.msk.f32.mxu0 %vm30_vm0, %v26_v2  ;;  %v143_v12 = vld [vmem:[%s221_s2] ss:$0 sm:$0xff]  ;;  %v132_v14 = vld [vmem:[%s222_s3 + $0x8] sm:$0xff] }
   0x4   :  { %156 = vmatprep.subr.bf16.mxu0 %v155_v4  ;;  %v131_v16 = vld [vmem:[%s222_s3] sm:$0xff] }
   0x5   :  { %158 = vmatpush3.bf16.msra.mxu0 %v155_v4 }
   0x8   :  { %153 = vmatmul.mubr.msk.f32.vlgmr.msra.gmra.mrb[0].mxu0 %vm30_vm0, %v27_v5  ;;  %v25_v6 = vld [vmem:[#allocation2 + $0x8] sm:$0xff]  ;;  %v24_v7 = vld [vmem:[#allocation2] sm:$0xff] }
  0xdb   :  { %v154_v8 = vpop.f32.mrb[0].mxu0 }
  0xdc   :  { %v113_v9 = vadd.f32 %v154_v8, %v25_v6  ;;  %v103_v10 = vpop.f32.mrb[1].mxu0 }
  0xdd   :  { %v112_v11 = vadd.f32 %v103_v10, %v24_v7 }
  0xde   :  { %116 = vst.msk [vmem:[#allocation2 + $0x8] sm:$0xff] %vm21_vm1, %v113_v9 }
  0xdf   :  { %115 = vst.msk [vmem:[#allocation2] sm:$0xff] %vm21_vm1, %v112_v11 }
  0xe5   :  { %v121_v13 = vld [vmem:[#allocation2 + $0x8] sm:$0xff] }
  0xe6   :  { %v130_v15 = vadd.f32 %v143_v12, %v121_v13  ;;  %v120_v17 = vld [vmem:[#allocation2] sm:$0xff] }
  0xe7   :  { %v129_v18 = vadd.f32 %v143_v12, %v120_v17 }
  0xe8   :  { %v134_v19 = vadd.f32 %v132_v14, %v130_v15 }
  0xe9   :  { %v133_v20 = vadd.f32 %v131_v16, %v129_v18 }
  0xea   :  { %136 = vst.msk [vmem:[%s223_s4 + $0x8] sm:$0xff] %vm21_vm1, %v134_v19 }
  0xeb   :  { %135 = vst.msk [vmem:[%s223_s4] sm:$0xff] %vm21_vm1, %v133_v20 }

// kernel: _lambda_.26
= control target key start
LH: loop header
LB: loop body
LE: loop exit
PB: predicated region body
PF: predicated region fallthrough
CT: control target
= control target key end

     0   :  { %vm32_vm0 = vcmask 261120   ;;  %s348_s3 = inlined_call_operand.vmem [shape: f32[32,32], index: 3, kind: input, shape index: {}]   ;;  %s349_s2 = inlined_call_operand.vmem [shape: f32[32,32], index: 2, kind: input, shape index: {}]   ;;  %s350_s1 = inlined_call_operand.vmem [shape: f32[16,32], index: 1, kind: input, shape index: {}]   ;;  %s351_s0 = inlined_call_operand.vmem [shape: f32[16,32], index: 0, kind: input, shape index: {}]   ;;  %s352_s4 = inlined_call_operand.vmem [shape: f32[1,32], index: 4, kind: input, shape index: {}]   ;;  %s353_s5 = inlined_call_operand.vmem [shape: f32[16,32], index: 5, kind: output, shape index: {}]  }
   0x1   :  { %v28_v0 = vld [vmem:[%s348_s3] sm:$0xff]  ;;  %v29_v1 = vld [vmem:[%s348_s3 + $0x8] sm:$0xff]  ;;  %v30_v5 = vld [vmem:[%s348_s3 + $0x10] sm:$0xff] }
   0x2   :  { %v22_v2 = vld [vmem:[%s349_s2] sm:$0xff]  ;;  %v249_v3 = vpack.c.bf16 %v29_v1, %v28_v0  ;;  %v23_v4 = vld [vmem:[%s349_s2 + $0x8] sm:$0xff]  ;;  %v31_v6 = vld [vmem:[%s348_s3 + $0x18] sm:$0xff] }
   0x3   :  { %v257_v7 = vpack.c.bf16 %v23_v4, %v22_v2  ;;  %v253_v8 = vpack.c.bf16 %v31_v6, %v30_v5  ;;  %v24_v9 = vld [vmem:[%s349_s2 + $0x10] sm:$0xff]  ;;  %v25_v10 = vld [vmem:[%s349_s2 + $0x18] sm:$0xff]  ;;  %v26_v11 = vld [vmem:[%s350_s1] sm:$0xff] }
   0x4   :  { %250 = vmatprep.subr.bf16.mxu1 %v249_v3  ;;  %v261_v12 = vpack.c.bf16 %v25_v10, %v24_v9  ;;  %235 = vmatprep.mubr.msk.f32.mxu1 %vm32_vm0, %v26_v11  ;;  %v20_v13 = vld [vmem:[%s351_s0] sm:$0xff]  ;;  %v27_v14 = vld [vmem:[%s350_s1 + $0x8] sm:$0xff] }
   0x5   :  { %258 = vmatprep.subr.bf16.mxu0 %v257_v7  ;;  %252 = vmatpush3.bf16.msra.mxu1 %v249_v3  ;;  %v21_v15 = vld [vmem:[%s351_s0 + $0x8] sm:$0xff]  ;;  %v214_v18 = vld [vmem:[%s352_s4] ss:$0 sm:$0xff] }
   0x6   :  { %260 = vmatpush3.bf16.msra.mxu0 %v257_v7  ;;  %254 = vmatprep.subr.bf16.mxu1 %v253_v8 }
   0x7   :  { %262 = vmatprep.subr.bf16.mxu0 %v261_v12  ;;  %246 = vmatprep.mubr.msk.f32.mxu0 %vm32_vm0, %v20_v13 }
   0x9   :  { %256 = vmatpush3.bf16.msra.mxu1 %v253_v8 }
   0xa   :  { %264 = vmatpush3.bf16.msra.mxu0 %v261_v12 }
   0xc   :  { %236 = vmatmul.mubr.msk.f32.vlgmr.msra.gmra.mrb[0].mxu1 %vm32_vm0, %v27_v14 }
   0xd   :  { %247 = vmatmul.mubr.msk.f32.vlgmr.msra.gmra.mrb[0].mxu0 %vm32_vm0, %v21_v15 }
  0xdf   :  { %v237_v16 = vpop.f32.mrb[0].mxu1 }
  0xe0   :  { %v248_v17 = vpop.f32.mrb[0].mxu0  ;;  %v105_v19 = vpop.f32.mrb[1].mxu1 }
  0xe1   :  { %v192_v20 = vadd.f32 %v248_v17, %v237_v16  ;;  %v186_v21 = vpop.f32.mrb[1].mxu0 }
  0xe2   :  { %v187_v22 = vadd.f32 %v186_v21, %v105_v19 }
  0xe3   :  { %v203_v23 = vadd.f32 %v214_v18, %v192_v20 }
  0xe4   :  { %v202_v24 = vadd.f32 %v214_v18, %v187_v22 }
  0xe5   :  { %205 = vst.msk [vmem:[%s353_s5 + $0x8] sm:$0xff] %vm32_vm0, %v203_v23 }
  0xe6   :  { %204 = vst.msk [vmem:[%s353_s5] sm:$0xff] %vm32_vm0, %v202_v24 }

// kernel: _lambda_.15
= control target key start
LH: loop header
LB: loop body
LE: loop exit
PB: predicated region body
PF: predicated region fallthrough
CT: control target
= control target key end

     0   :  { %s1486_s25 = smov 0   ;;  %s1626_s0 = inlined_call_operand.vmem [shape: f32[2,8,16], index: 0, kind: input, shape index: {}]   ;;  %s1627_s1 = inlined_call_operand.vmem [shape: f32[16,48], index: 1, kind: input, shape index: {}]   ;;  %s1628_s2 = inlined_call_operand.vmem [shape: f32[1,48], index: 2, kind: input, shape index: {}]   ;;  %s1629_s3 = inlined_call_operand.vmem [shape: f32[16,16], index: 3, kind: input, shape index: {}]   ;;  %s1630_s4 = inlined_call_operand.vmem [shape: f32[1,16], index: 4, kind: input, shape index: {}]   ;;  %s1631_s5 = inlined_call_operand.vmem [shape: f32[1,16], index: 5, kind: input, shape index: {}]   ;;  %s1632_s6 = inlined_call_operand.vmem [shape: f32[1,16], index: 6, kind: input, shape index: {}]   ;;  %s1633_s7 = inlined_call_operand.vmem [shape: f32[16,64], index: 7, kind: input, shape index: {}]   ;;  %s1634_s8 = inlined_call_operand.vmem [shape: f32[1,64], index: 8, kind: input, shape index: {}]   ;;  %s1635_s9 = inlined_call_operand.vmem [shape: f32[64,16], index: 9, kind: input, shape index: {}]   ;;  %s1636_s10 = inlined_call_operand.vmem [shape: f32[1,16], index: 10, kind: input, shape index: {}]   ;;  %s1637_s11 = inlined_call_operand.vmem [shape: f32[1,16], index: 11, kind: input, shape index: {}]   ;;  %s1638_s12 = inlined_call_operand.vmem [shape: f32[1,16], index: 12, kind: input, shape index: {}]   ;;  %s1639_s13 = inlined_call_operand.vmem [shape: f32[2,8,16], index: 13, kind: output, shape index: {}]  }
   0x1 LB: > { %s1234_s26 = sadd.s32 4294967295, %s1405_s25   ;;  %p1238_p0 = scmp.ge.s32.totalorder %s1405_s25, 1  ;;  %s1405_s25 = sphi %s1486_s25, %s23_s25  }
   0x2   : > { %p386_p1 = scmp.lt.s32.totalorder %s1405_s25, 3 }
   0x4   : > { %p387_p2 = pnand %p1238_p0, %p386_p1 }
   0x5   : > { %v437_v0 = vld [vmem:[%s1627_s1] sm:$0xff] (!%p387_p2)  ;;  %v438_v1 = vld [vmem:[%s1627_s1 + $0x8] sm:$0xff] (!%p387_p2)  ;;  %p428_p3 = scmp.lt.s32.totalorder (!%p387_p2), %s1234_s26, 1  ;;  %v1407_v2 = vmov (!%p387_p2), 0.0|0.0   ;;  %vm1408_vm0 = vmmov (!%p387_p2), 0   ;;  %v1409_v4 = vmov (!%p387_p2), 0.0  }
   0x6   : > { %390 = sbr.rel (%p387_p2) target bundleno = 2509 (0x9cd), region = 72  ;;  %1347 = vmatprep.subr.bf16.mxu0 (!%p387_p2), %v1407_v2  ;;  %v1348_v3 = vpack.c.bf16 (!%p387_p2), %v438_v1, %v437_v0  ;;  %1291 = vmatprep.mubr.msk.f32.mxu0 (!%p387_p2), %vm1408_vm0, %v1409_v4  ;;  %vm446_vm1 = vcmask (!%p387_p2), 130048   ;;  %v1241_v6 = vld [vmem:[%s1628_s2] ss:$0 sm:$0xff] (!%p387_p2)  ;;  %s1410_s20 = smov (!%p387_p2), 120   ;;  %vm523_vm2 = vcmask (!%p387_p2), 64512  }
   0x7   : > { %1304 = vmatprep.subr.mxu1 (!%p387_p2), %v1409_v4  ;;  %1306 = vmatprep.mubr.msk.f32.mxu1 (!%p387_p2), %vm1408_vm0, %v1409_v4  ;;  %s1411_s21 = smov (!%p387_p2), 112   ;;  %s1412_s22 = smov (!%p387_p2), 104   ;;  %v857_v39 = vld [vmem:[%s1629_s3] sm:$0xff] (!%p387_p2)  ;;  %v858_v40 = vld [vmem:[%s1629_s3 + $0x8] sm:$0xff] (!%p387_p2)  ;;  %vm1076_vm3 = vcmask (!%p387_p2), 523264  }
   0x8   : > { %1349 = vmatpush3.bf16.msra.mxu0 (!%p387_p2), %v1348_v3  ;;  %s1413_s23 = smov (!%p387_p2), 88   ;;  %s1414_s24 = smov (!%p387_p2), 96   ;;  %v1351_v41 = vpack.c.bf16 (!%p387_p2), %v858_v40, %v857_v39  ;;  %v1249_v48 = vld [vmem:[%s1630_s4] ss:$0 sm:$0xff] (!%p387_p2)  ;;  %v971_v60 = vld [vmem:[%s1633_s7 + $0x8] sm:$0xff] (!%p387_p2) }
   0x9   : > { %1294 = vmatprep.subr.mxu0 (!%p387_p2), %v1409_v4  ;;  %s1415_s15 = smov (!%p387_p2), 8   ;;  %v970_v59 = vld [vmem:[%s1633_s7] sm:$0xff] (!%p387_p2) }
   0xa   : > { %v1354_v61 = vpack.c.bf16 (!%p387_p2), %v971_v60, %v970_v59  ;;  %v1251_v3 = vld [vmem:[%s1631_s5] ss:$0 sm:$0xff] (!%p387_p2) }
   0xd   : > { %s1641_s26 = smov (!%p428_p3, %s1234_s26), 1 }
   0xe   : > { %s1239_s14 = sshll.u32 %s1641_s26, 3 }
   0xf   : > { %s431_s17 = scalar_lea.vmem %s1626_s0, %s1239_s14 }
  0x10   : > { %v1515_v5 = vld [vmem:[%s431_s17] sm:$0xff] }
  0x11   : > { %1292 = vmatmul.mubr.msk.f32.vlgmr.msra.gmra.mrb[0].mxu0 %vm446_vm1, %v1515_v5 }
  0x12   : > { %1296 = vmatprep.mubr.msk.f32.mxu0 %vm1408_vm0, %v1409_v4 }
  0xe4   : > { %v516_v7 = vpop.f32.mrb[0].mxu0 }
  0xe5   : > { %v517_v8 = vadd.f32 %v1241_v6, %v516_v7  ;;  %v1293_v9 = vpop.f32.mrb[1].mxu0 }
  0xe6   : > { %v1062_v9 = vld [vmem:[%s1635_s9 + $0x8] sm:$0xff] }
  0xe7   : > { %686 = vrot.lane.b32.xlu1 %v517_v8, %s1410_s20  ;;  %521 = vrot.lane.b32.xlu0 %v517_v8, %s1411_s21 }
  0xeb   : > { %688 = vrot.lane.b32.xlu0 %v517_v8, %s1412_s22 }
 0x159   : > { %v522_v10 = vpop.permute.xlu0 %521  ;;  %v687_v12 = vpop.permute.xlu1 %686 }
 0x15a   : > { %1295 = vmatpush3.xpose.msk.msra.mxu0 %vm523_vm2, %v522_v10 }
 0x15b   : > { %1299 = vmatprep.subr.mxu0 %v1409_v4 }
 0x15d   : > { %1297 = vmatmul.mubr.msk.f32.vlgmr.msra.gmra.mrb[2].mxu0 %vm523_vm2, %v517_v8  ;;  %v689_v11 = vpop.permute.xlu0 %688 }
 0x15e   : > { %1305 = vmatpush3.xpose.msk.msra.mxu1 %vm523_vm2, %v689_v11  ;;  %1301 = vmatprep.mubr.msk.f32.mxu0 %vm1408_vm0, %v1409_v4  ;;  %v1063_v11 = vld [vmem:[%s1635_s9 + $0x10] sm:$0xff] }
 0x15f   : > { %1350 = vmatprep.subr.bf16.mxu1 %v1407_v2 }
 0x161   : > { %1307 = vmatmul.mubr.msk.f32.vlgmr.msra.gmra.mrb[0].mxu1 %vm523_vm2, %v687_v12  ;;  %v1064_v12 = vld [vmem:[%s1635_s9 + $0x18] sm:$0xff] }
 0x162   : > { %1318 = vmatprep.mubr.msk.f32.mxu1 %vm1408_vm0, %v1409_v4  ;;  %1352 = vmatpush3.bf16.msra.mxu1 %v1351_v41 }
 0x163   : > { %1356 = vmatprep.subr.bf16.mxu1 %v1407_v2 }
 0x230   : > { %v594_v13 = vpop.f32.mrb[2].mxu0 }
 0x231   : > { %v598_v14 = vmul.f32 0.35355338, %v594_v13  ;;  %v1298_v15 = vpop.f32.mrb[3].mxu0  ;;  %v1360_v13 = vpack.c.bf16 %v1064_v12, %v1063_v11 }
 0x232   : > { %v1066_v15 = vld [vmem:[%s1635_s9 + $0x28] sm:$0xff] }
 0x233   : > { %v599_v16 = vsel %vm523_vm2, %v598_v14, -inf }
 0x234   : > { %v760_v17 = vpop.f32.mrb[0].mxu1  ;;  %600 = vmax.xlane.f32.xlu1 %v599_v16 }
 0x235   : > { %v764_v18 = vmul.f32 0.35355338, %v760_v17  ;;  %v1308_v19 = vpop.f32.mrb[1].mxu1  ;;  %v1067_v17 = vld [vmem:[%s1635_s9 + $0x30] sm:$0xff] }
 0x237   : > { %v765_v20 = vsel %vm523_vm2, %v764_v18, -inf }
 0x238   : > { %766 = vmax.xlane.f32.xlu0 %v765_v20  ;;  %v1253_v20 = vld [vmem:[%s1634_s8] ss:$0 sm:$0xff] }
 0x2c1   : > { %v601_v21 = vpop.xlane.xlu1 %600 }
 0x2c2   : > { %v602_v22 = vsub.f32 %v598_v14, %v601_v21  ;;  %v1065_v14 = vld [vmem:[%s1635_s9 + $0x20] sm:$0xff] }
 0x2c3   : > { %v1363_v16 = vpack.c.bf16 %v1066_v15, %v1065_v14 }
 0x2c4   : > { %v603_v23 = vmul.f32 1.442695, %v602_v22 }
 0x2c5   : > { %v767_v24 = vpop.xlane.xlu0 %766 }
 0x2c6   : > { %1385 = vpow2.f32 %v603_v23  ;;  %v768_v25 = vsub.f32 %v764_v18, %v767_v24  ;;  %v1068_v18 = vld [vmem:[%s1635_s9 + $0x38] sm:$0xff] }
 0x2c7   : > { %v1366_v19 = vpack.c.bf16 %v1068_v18, %v1067_v17 }
 0x2c8   : > { %v769_v26 = vmul.f32 1.442695, %v768_v25 }
 0x2ca   : > { %1387 = vpow2.f32 %v769_v26 }
 0x2d0   : > { %v1386_v27 = vpop.eup %1385 }
 0x2d1   : > { %v605_v28 = vsel %vm523_vm2, %v1386_v27, 0.0 }
 0x2d2   : > { %606 = vadd.xlane.f32.xlu0 %v605_v28 }
 0x2d4   : > { %v1388_v29 = vpop.eup %1387 }
 0x2d5   : > { %v771_v30 = vsel %vm523_vm2, %v1388_v29, 0.0 }
 0x2d6   : > { %772 = vadd.xlane.f32.xlu1 %v771_v30 }
 0x2e7   : > { %776 = vrot.lane.b32.xlu1 %v517_v8, %s1413_s23 }
 0x2e8   : > { %610 = vrot.lane.b32.xlu0 %v517_v8, %s1414_s24  ;;  %v1061_v8 = vld [vmem:[%s1635_s9] sm:$0xff]  ;;  %s435_s24 = scalar_lea.vmem %s1639_s13, %s1239_s14 }
 0x2e9   : > { %v1357_v10 = vpack.c.bf16 %v1062_v9, %v1061_v8 }
 0x35f   : > { %v607_v31 = vpop.xlane.xlu0 %606 }
 0x360   : > { %1389 = vrcp.f32 %v607_v31 }
 0x363   : > { %v611_v32 = vpop.permute.xlu0 %610  ;;  %v773_v33 = vpop.xlane.xlu1 %772 }
 0x364   : > { %1391 = vrcp.f32 %v773_v33  ;;  %1300 = vmatpush3.msra.mxu0 %v611_v32  ;;  %v1255_v32 = vld [vmem:[%s1636_s10] ss:$0 sm:$0xff] }
 0x365   : > { %1309 = vmatprep.subr.mxu0 %v1409_v4 }
 0x367   : > { %v777_v36 = vpop.permute.xlu1 %776 }
 0x36a   : > { %v1390_v34 = vpop.eup %1389 }
 0x36b   : > { %v609_v35 = vmul.f32 %v1390_v34, %v1386_v27 }
 0x36d   : > { %1302 = vmatmul.mubr.msk.f32.vlgmr.msra.gmra.mrb[4].mxu0 %vm523_vm2, %v609_v35 }
 0x36e   : > { %v1392_v37 = vpop.eup %1391  ;;  %1310 = vmatpush3.msra.mxu0 %v777_v36  ;;  %1311 = vmatprep.mubr.msk.f32.mxu0 %vm1408_vm0, %v1409_v4 }
 0x36f   : > { %v775_v38 = vmul.f32 %v1392_v37, %v1388_v29  ;;  %1353 = vmatprep.subr.bf16.mxu0 %v1407_v2 }
 0x371   : > { %1312 = vmatmul.mubr.msk.f32.vlgmr.msra.gmra.mrb[6].mxu0 %vm523_vm2, %v775_v38 }
 0x372   : > { %1325 = vmatprep.mubr.msk.f32.mxu0 %vm1408_vm0, %v1409_v4  ;;  %1355 = vmatpush3.bf16.msra.mxu0 %v1354_v61 }
 0x440   : > { %v682_v42 = vpop.f32.mrb[4].mxu0 }
 0x441   : > { %v1303_v43 = vpop.f32.mrb[5].mxu0 }
 0x444   : > { %v848_v44 = vpop.f32.mrb[6].mxu0 }
 0x445   : > { %853 = vrot.lane.b32.xlu1 %v848_v44, %s1415_s15  ;;  %v1313_v45 = vpop.f32.mrb[7].mxu0 }
 0x4b7   : > { %v854_v46 = vpop.permute.xlu1 %853 }
 0x4b8   : > { %v856_v47 = vsel %vm523_vm2, %v682_v42, %v854_v46 }
 0x4b9   : > { %1319 = vmatmul.mubr.msk.f32.vlgmr.msra.gmra.mrb[2].mxu1 %vm446_vm1, %v856_v47  ;;  %v1257_v47 = vld [vmem:[%s1637_s11] ss:$0 sm:$0xff] }
 0x4ba   : > { %1344 = vmatprep.mubr.msk.f32.mxu1 %vm1408_vm0, %v1409_v4  ;;  %1358 = vmatpush3.bf16.msra.mxu1 %v1357_v10 }
 0x4bb   : > { %1359 = vmatprep.subr.bf16.mxu1 %v1407_v2 }
 0x4be   : > { %1361 = vmatpush3.bf16.msra.mxu1 %v1360_v13 }
 0x4bf   : > { %1362 = vmatprep.subr.bf16.mxu1 %v1407_v2 }
 0x4c2   : > { %1364 = vmatpush3.bf16.msra.mxu1 %v1363_v16 }
 0x4c3   : > { %1365 = vmatprep.subr.bf16.mxu1 %v1407_v2 }
 0x4c6   : > { %1367 = vmatpush3.bf16.msra.mxu1 %v1366_v19 }
 0x58c   : > { %v935_v49 = vpop.f32.mrb[2].mxu1 }
 0x58d   : > { %v936_v50 = vadd.f32 %v1249_v48, %v935_v49  ;;  %v1320_v51 = vpop.f32.mrb[3].mxu1  ;;  %v1258_v49 = vld [vmem:[%s1638_s12] ss:$0 sm:$0xff] }
 0x58f   : > { %v939_v52 = vadd.f32 %v936_v50, %v1515_v5  ;;  %v1252_v5 = vld [vmem:[%s1632_s6] ss:$0 sm:$0xff] }
 0x591   : > { %v942_v53 = vsel %vm446_vm1, %v939_v52, 0.0 }
 0x592   : > { %943 = vadd.xlane.f32.xlu0 %v942_v53 }
 0x61f   : > { %v944_v54 = vpop.xlane.xlu0 %943 }
 0x620   : > { %v946_v55 = vmul.f32 0.0625, %v944_v54 }
 0x622   : > { %v947_v56 = vsub.f32 %v939_v52, %v946_v55 }
 0x624   : > { %v948_v57 = vmul.f32 %v947_v56, %v947_v56 }
 0x626   : > { %v949_v58 = vsel %vm446_vm1, %v948_v57, 0.0 }
 0x627   : > { %950 = vadd.xlane.f32.xlu1 %v949_v58 }
 0x6b4   : > { %v951_v62 = vpop.xlane.xlu1 %950 }
 0x6b5   : > { %v952_v63 = vmul.f32 0.0625, %v951_v62 }
 0x6b7   : > { %v953_v0 = vadd.f32 1e-05, %v952_v63 }
 0x6b9   : > { %1393 = vrsqrt.f32 %v953_v0 }
 0x6c3   : > { %v1394_v1 = vpop.eup %1393 }
 0x6c4   : > { %v955_v4 = vmul.f32 %v1394_v1, %v947_v56 }
 0x6c6   : > { %v962_v6 = vmul.f32 %v1251_v3, %v955_v4 }
 0x6c8   : > { %v969_v7 = vadd.f32 %v1252_v5, %v962_v6 }
 0x6ca   : > { %1326 = vmatmul.mubr.msk.f32.vlgmr.msra.gmra.mrb[8].mxu0 %vm446_vm1, %v969_v7 }
 0x79d   : > { %v1048_v21 = vpop.f32.mrb[8].mxu0 }
 0x79e   : > { %v1049_v22 = vadd.f32 %v1253_v20, %v1048_v21  ;;  %v1327_v23 = vpop.f32.mrb[9].mxu0 }
 0x7a0   : > { %v1052_v24 = vmul.f32 %v1049_v22, %v1049_v22 }
 0x7a2   : > { %v1053_v25 = vmul.f32 %v1052_v24, %v1049_v22 }
 0x7a4   : > { %v1054_v2 = vmul.f32 0.044715, %v1053_v25 }
 0x7a6   : > { %v1055_v26 = vadd.f32 %v1054_v2, %v1049_v22 }
 0x7a8   : > { %v1056_v27 = vmul.f32 0.7978846, %v1055_v26 }
 0x7aa   : > { %1395 = vtanh.f32 %v1056_v27 }
 0x7b4   : > { %v1396_v28 = vpop.eup %1395 }
 0x7b5   : > { %v1058_v29 = vadd.f32 1.0, %v1396_v28 }
 0x7b7   : > { %v1059_v30 = vmul.f32 0.5, %v1058_v29 }
 0x7b9   : > { %v1060_v31 = vmul.f32 %v1059_v30, %v1049_v22 }
 0x7bb   : > { %1345 = vmatmul.mubr.msk.f32.vlgmr.msra.gmra.mrb[4].mxu1 %vm1076_vm3, %v1060_v31 }
 0x88e   : > { %v1146_v33 = vpop.f32.mrb[4].mxu1 }
 0x88f   : > { %v1147_v34 = vadd.f32 %v1255_v32, %v1146_v33  ;;  %v1346_v35 = vpop.f32.mrb[5].mxu1 }
 0x891   : > { %v1150_v36 = vadd.f32 %v1147_v34, %v969_v7 }
 0x893   : > { %v1153_v37 = vsel %vm446_vm1, %v1150_v36, 0.0 }
 0x894   : > { %1154 = vadd.xlane.f32.xlu0 %v1153_v37 }
 0x921   : > { %v1155_v38 = vpop.xlane.xlu0 %1154 }
 0x922   : > { %v1156_v39 = vmul.f32 0.0625, %v1155_v38 }
 0x924   : > { %v1157_v40 = vsub.f32 %v1150_v36, %v1156_v39 }
 0x926   : > { %v1158_v41 = vmul.f32 %v1157_v40, %v1157_v40 }
 0x928   : > { %v1159_v42 = vsel %vm446_vm1, %v1158_v41, 0.0 }
 0x929   : > { %1160 = vadd.xlane.f32.xlu0 %v1159_v42 }
 0x9b6   : > { %v1161_v43 = vpop.xlane.xlu0 %1160 }
 0x9b7   : > { %v1162_v44 = vmul.f32 0.0625, %v1161_v43 }
 0x9b9   : > { %v1163_v45 = vadd.f32 1e-05, %v1162_v44 }
 0x9bb   : > { %1397 = vrsqrt.f32 %v1163_v45 }
 0x9c5   : > { %v1398_v46 = vpop.eup %1397 }
 0x9c6   : > { %v1165_v48 = vmul.f32 %v1398_v46, %v1157_v40 }
 0x9c8   : > { %v1172_v50 = vmul.f32 %v1257_v47, %v1165_v48 }
 0x9ca   : > { %v1179_v51 = vadd.f32 %v1258_v49, %v1172_v50 }
 0x9cc   : > { %1180 = vst.msk [vmem:[%s435_s24] sm:$0xff] %vm446_vm1, %v1179_v51 }
 0x9cd PF: > { %s23_s25 = sadd.s32 1, %s1405_s25  }
 0x9ce   : > { %p20_p4 = scmp.ge.s32.totalorder %s23_s25, 4  }
 0x9d0   :  { %22 = sbr.rel (!%p20_p4) target bundleno = 1 (0x1), region = 102 }

// kernel: _lambda_.27
= control target key start
LH: loop header
LB: loop body
LE: loop exit
PB: predicated region body
PF: predicated region fallthrough
CT: control target
= control target key end

     0   :  { %v249_v0 = vmov 0.0|0.0   ;;  %vm250_vm0 = vmmov 0   ;;  %v251_v4 = vmov 0.0   ;;  %vm34_vm1 = vcmask 261120   ;;  %s318_s1 = inlined_call_operand.vmem [shape: f32[32,32], index: 1, kind: input, shape index: {}]   ;;  %s319_s3 = inlined_call_operand.vmem [shape: f32[32,1], index: 3, kind: input, shape index: {}]   ;;  %s320_s0 = inlined_call_operand.vmem [shape: f32[2,32], index: 0, kind: input, shape index: {}]   ;;  %s321_s4 = inlined_call_operand.<no memory space> [shape: f32[1,1], index: 4, kind: input, shape index: {}]   ;;  %s322_s2 = inlined_call_operand.vmem [shape: f32[1,32], index: 2, kind: input, shape index: {}]   ;;  %s323_s5 = inlined_call_operand.vmem [shape: f32[2,1], index: 5, kind: output, shape index: {}]  }
   0x1   :  { %234 = vmatprep.subr.bf16.mxu0 %v249_v0  ;;  %v23_v1 = vld [vmem:[%s318_s1] sm:$0xff]  ;;  %v24_v2 = vld [vmem:[%s318_s1 + $0x8] sm:$0xff]  ;;  %v25_v3 = vld [vmem:[%s318_s1 + $0x10] sm:$0xff]  ;;  %220 = vmatprep.mubr.msk.f32.mxu0 %vm250_vm0, %v251_v4  ;;  %v10_v15 = vstv %s321_s4  ;;  %vm192_vm2 = vcmask 1024  }
   0x2   :  { %v235_v5 = vpack.c.bf16 %v24_v2, %v23_v1  ;;  %v26_v6 = vld [vmem:[%s318_s1 + $0x18] sm:$0xff]  ;;  %240 = vmatprep.subr.bf16.mxu1 %v249_v0  ;;  %v108_v7 = vld [vmem:[%s319_s3] sm:$0xff]  ;;  %231 = vmatprep.mubr.msk.f32.mxu1 %vm250_vm0, %v251_v4  ;;  %v109_v8 = vld [vmem:[%s319_s3 + $0x8] sm:$0xff]  ;;  %11 = vst [vmem:[#allocation2] sm:$0x1] %v10_v15 }
   0x3   :  { %v238_v9 = vpack.c.bf16 %v26_v6, %v25_v3  ;;  %v241_v10 = vpack.c.bf16 %v109_v8, %v108_v7  ;;  %v22_v11 = vld [vmem:[%s320_s0] sm:$0x3]  ;;  %v110_v12 = vld [vmem:[%s319_s3 + $0x10] sm:$0xff]  ;;  %v111_v13 = vld [vmem:[%s319_s3 + $0x18] sm:$0xff] }
   0x4   :  { %236 = vmatpush3.bf16.msra.mxu0 %v235_v5  ;;  %v244_v14 = vpack.c.bf16 %v111_v13, %v110_v12  ;;  %v198_v16 = vld [vmem:[%s322_s2] ss:$0 sm:$0xff] }
   0x5   :  { %237 = vmatprep.subr.bf16.mxu0 %v249_v0  ;;  %242 = vmatpush3.bf16.msra.mxu1 %v241_v10 }
   0x6   :  { %243 = vmatprep.subr.bf16.mxu1 %v249_v0 }
   0x8   :  { %239 = vmatpush3.bf16.msra.mxu0 %v238_v9 }
   0x9   :  { %245 = vmatpush3.bf16.msra.mxu1 %v244_v14  ;;  %v200_v20 = vld [vmem:[#allocation2] ss:$0 sm:$0xff] }
   0xb   :  { %221 = vmatmul.mubr.msk.f32.vlgmr.msra.gmra.mrb[0].mxu0 %vm34_vm1, %v22_v11 }
  0xde   :  { %v104_v17 = vpop.f32.mrb[0].mxu0 }
  0xdf   :  { %v105_v18 = vadd.f32 %v198_v16, %v104_v17  ;;  %v222_v19 = vpop.f32.mrb[1].mxu0 }
  0xe1   :  { %232 = vmatmul.mubr.msk.f32.vlgmr.msra.gmra.mrb[0].mxu1 %vm34_vm1, %v105_v18 }
 0x1b4   :  { %v188_v21 = vpop.f32.mrb[0].mxu1 }
 0x1b5   :  { %v189_v22 = vadd.f32 %v200_v20, %v188_v21  ;;  %v233_v23 = vpop.f32.mrb[1].mxu1 }
 0x1b7   :  { %193 = vst.msk [vmem:[%s323_s5] sm:$0x3] %vm192_vm2, %v189_v22 }

</bundles_post_ra>
